<compile_context>
chip_gen: v6e
topology: v6e:2x2x1
jax: 0.10.0
libtpu: 0.0.40
codegen_flags: <defaults>
</compile_context>

<pallas_src>
import math
import functools

import jax
import jax.numpy as jnp
import numpy as np
from jax.experimental import pallas as pl
from jax.experimental.pallas import tpu as pltpu

# ----------------------------- configuration -------------------------------
SRC_VOCAB = 128
TRG_VOCAB = 128     # multiple of 128 -> lane-dense logits
D_MODEL = 128       # multiple of 128 -> lane-dense activations
N_LAYERS = 2
HEADS = 4           # dk = 32
D_FF = 256          # (PyTorch default is 2048; shrunk for the synthetic test)
BATCH = 2
S_SRC = 8           # source sequence length
T_TRG = 8           # target sequence length
EPS = 1e-6


# --------------------------- in-kernel helpers ------------------------------
def _matmul_bf16(x2d, w_bf16):
    # bf16 MXU matmul with f32 accumulation (single MXU pass).
    return jnp.dot(x2d.astype(jnp.bfloat16), w_bf16,
                   preferred_element_type=jnp.float32)


def _layer_norm(v, alpha, bias, d_model, eps):
    # Norm(x) = alpha * (x - mean) / (std_unbiased + eps) + bias
    # (torch.std default is unbiased -> divide by d_model - 1).  f32 stats.
    mu = jnp.mean(v, axis=-1, keepdims=True)
    d = v - mu
    var = jnp.sum(d * d, axis=-1, keepdims=True) * (1.0 / (d_model - 1))
    inv = pl.reciprocal(jnp.sqrt(var) + eps, approx=True)   # EUP, not VPU divide
    return alpha * (d * inv) + bias


def _attn_core(q, k, v, add_mask, heads, dk):
    """q:(B,Tq,D) bf16, k/v:(B,Tk,D) bf16, add_mask: additive 0/-1e9 f32.

    Heads are a short static loop (H small); each head is ONE B-batched 3D
    einsum for scores and one for p@v (no per-batch unroll, no stacks).  The
    head outputs are lane-concatenated once so the caller can run a single
    full-depth K=D output projection.
    """
    B, Tq, D = q.shape
    scale = 1.0 / math.sqrt(dk)
    outs = []
    for h in range(heads):
        lo, hi = h * dk, (h + 1) * dk
        # NOTE: contraction on the last dim of both operands (A.B^T form) is
        # inherent at per-head dk granularity; negligible at these tile sizes.
        sc = jnp.einsum("bqd,bkd->bqk", q[:, :, lo:hi], k[:, :, lo:hi],
                        preferred_element_type=jnp.float32) * scale
        sc = sc + add_mask                                  # additive mask
        m = jnp.max(sc, axis=-1, keepdims=True)
        p = jnp.exp(sc - m)
        p = p * pl.reciprocal(jnp.sum(p, axis=-1, keepdims=True), approx=True)
        outs.append(jnp.einsum("bqk,bkd->bqd", p.astype(jnp.bfloat16),
                               v[:, :, lo:hi],
                               preferred_element_type=jnp.float32))
    return jnp.concatenate(outs, axis=-1)        # lane concat -> (B,Tq,D) f32


def _mha_self(x, add_mask, w_qkv, w_o, bq, bk, bv, bo, heads):
    """Self-attention with fused QKV matmul and K=D head-concat out proj.

    w_qkv: (D, 3D) bf16 = [Wq|Wk|Wv], w_o: (D, D) bf16.
    """
    B, T, D = x.shape
    dk = D // heads
    qkv = _matmul_bf16(x.reshape(B * T, D), w_qkv)            # (B*T, 3D) f32
    q = (qkv[:, 0:D] + bq).astype(jnp.bfloat16).reshape(B, T, D)
    k = (qkv[:, D:2 * D] + bk).astype(jnp.bfloat16).reshape(B, T, D)
    v = (qkv[:, 2 * D:3 * D] + bv).astype(jnp.bfloat16).reshape(B, T, D)
    o = _attn_core(q, k, v, add_mask, heads, dk)
    return (_matmul_bf16(o.reshape(B * T, D), w_o) + bo).reshape(B, T, D)


def _mha_cross(x_q, kv_in, add_mask, w_q, w_kv, w_o, bq, bk, bv, bo, heads):
    """Cross-attention: Q from x_q (f32), fused KV from kv_in (bf16 e_outputs).

    w_q: (D, D), w_kv: (D, 2D) = [Wk|Wv], w_o: (D, D) -- all bf16.
    """
    B, Tq, D = x_q.shape
    Tk = kv_in.shape[1]
    dk = D // heads
    q2 = _matmul_bf16(x_q.reshape(B * Tq, D), w_q)            # (B*Tq, D)  f32
    kv = _matmul_bf16(kv_in.reshape(B * Tk, D), w_kv)         # (B*Tk, 2D) f32
    q = (q2 + bq).astype(jnp.bfloat16).reshape(B, Tq, D)
    k = (kv[:, 0:D] + bk).astype(jnp.bfloat16).reshape(B, Tk, D)
    v = (kv[:, D:2 * D] + bv).astype(jnp.bfloat16).reshape(B, Tk, D)
    o = _attn_core(q, k, v, add_mask, heads, dk)
    return (_matmul_bf16(o.reshape(B * Tq, D), w_o) + bo).reshape(B, Tq, D)


# ------------------------------ Pallas kernels -------------------------------
def encoder_kernel(x_ref, amask_ref, pv_ref, aw_ref, w1_ref, b1_ref, w2_ref,
                   out_ref, state_ref, *, d_model, heads, n_layers, eps):
    l = pl.program_id(0)
    D = d_model

    # state_ref (f32 VMEM scratch) is the residual stream carried across the
    # layer axis; only the final (bf16) output slab is written back to HBM.
    @pl.when(l == 0)
    def _():
        state_ref[...] = x_ref[...]

    x = state_ref[...]                                # (B, S, D) f32
    B, S, _ = x.shape
    add_mask = amask_ref[...]                         # (B, 1, S) additive f32

    pv = pv_ref[0]                                    # (11, D) packed vectors
    # rows: 0-1 norm alpha, 2-3 norm bias, 4-7 attn b(q,k,v,o), 8 ff_b2,
    #       9 final alpha, 10 final bias

    def ln(v, a, b):
        return _layer_norm(v, a, b, d_model, eps)

    # --- sublayer 1: self-attention (fused QKV, lane slices of aw_ref) ---
    x2 = ln(x, pv[0:1], pv[2:3])
    x = x + _mha_self(x2, add_mask,
                      aw_ref[0, :, 0:3 * D], aw_ref[0, :, 3 * D:4 * D],
                      pv[4:5], pv[5:6], pv[6:7], pv[7:8], heads)

    # --- sublayer 2: position-wise feed-forward ---
    x2 = ln(x, pv[1:2], pv[3:4])
    h = jnp.maximum(_matmul_bf16(x2.reshape(B * S, D), w1_ref[0]) + b1_ref[0],
                    0.0)
    x = x + (_matmul_bf16(h, w2_ref[0]) + pv[8:9]).reshape(B, S, D)

    state_ref[...] = x

    @pl.when(l == n_layers - 1)
    def _():
        out_ref[...] = ln(x, pv[9:10], pv[10:11]).astype(out_ref.dtype)


def decoder_kernel(x_ref, e_ref, smask_ref, tmask_ref, pv_ref, aw_ref,
                   w1_ref, b1_ref, w2_ref, wout_ref, bout_ref,
                   out_ref, state_ref, *, d_model, heads, n_layers, eps):
    l = pl.program_id(0)
    D = d_model

    @pl.when(l == 0)
    def _():
        state_ref[...] = x_ref[...]

    x = state_ref[...]                                # (B, T, D) f32
    e = e_ref[...]                                    # (B, S, D) bf16
    B, T, _ = x.shape

    src_add = smask_ref[...]                          # (B, 1, S) additive f32
    trg_add = tmask_ref[...]                          # (B, T, T) additive f32

    pv = pv_ref[0]                                    # (17, D) packed vectors
    # rows: 0-2 norm alpha, 3-5 norm bias, 6-13 attn b(self qkvo, cross qkvo),
    #       14 ff_b2, 15 final alpha, 16 final bias

    def ln(v, a, b):
        return _layer_norm(v, a, b, d_model, eps)

    # --- sublayer 1: masked self-attention ---
    x2 = ln(x, pv[0:1], pv[3:4])
    x = x + _mha_self(x2, trg_add,
                      aw_ref[0, :, 0:3 * D], aw_ref[0, :, 3 * D:4 * D],
                      pv[6:7], pv[7:8], pv[8:9], pv[9:10], heads)

    # --- sublayer 2: encoder-decoder cross-attention ---
    x2 = ln(x, pv[1:2], pv[4:5])
    x = x + _mha_cross(x2, e, src_add,
                       aw_ref[0, :, 4 * D:5 * D], aw_ref[0, :, 5 * D:7 * D],
                       aw_ref[0, :, 7 * D:8 * D],
                       pv[10:11], pv[11:12], pv[12:13], pv[13:14], heads)

    # --- sublayer 3: feed-forward ---
    x2 = ln(x, pv[2:3], pv[5:6])
    h = jnp.maximum(_matmul_bf16(x2.reshape(B * T, D), w1_ref[0]) + b1_ref[0],
                    0.0)
    x = x + (_matmul_bf16(h, w2_ref[0]) + pv[14:15]).reshape(B, T, D)

    state_ref[...] = x

    # --- last layer: final Norm + output Linear (fused, lane-dense logits) ---
    @pl.when(l == n_layers - 1)
    def _():
        xf = ln(x, pv[15:16], pv[16:17])
        logits = _matmul_bf16(xf.reshape(B * T, D), wout_ref[...]) + bout_ref[...]
        out_ref[...] = logits.reshape(B, T, out_ref.shape[-1])


# ------------------------------- wrappers ------------------------------------
def _pack_enc_vectors(p):
    n, d = p["attn_W"].shape[0], p["norm_alpha"].shape[-1]
    return jnp.concatenate([
        p["norm_alpha"], p["norm_bias"], p["attn_b"], p["ff_b2"],
        jnp.broadcast_to(p["final_alpha"][None], (n, 1, d)),
        jnp.broadcast_to(p["final_bias"][None], (n, 1, d)),
    ], axis=1).astype(jnp.float32)                    # (N, 11, D)


def _pack_dec_vectors(p):
    n, d = p["attn_W"].shape[0], p["norm_alpha"].shape[-1]
    return jnp.concatenate([
        p["norm_alpha"], p["norm_bias"], p["attn_b"], p["ff_b2"],
        jnp.broadcast_to(p["final_alpha"][None], (n, 1, d)),
        jnp.broadcast_to(p["final_bias"][None], (n, 1, d)),
    ], axis=1).astype(jnp.float32)                    # (N, 17, D)


def encoder_pallas(x, src_add_mask, p):
    B, S, D = x.shape
    N = p["attn_W"].shape[0]
    DFF = p["ff_W1"].shape[-1]
    packed = _pack_enc_vectors(p)
    # Fused per-layer attention weights: [Wq|Wk|Wv|Wo] along lanes, bf16.
    w_attn = jnp.concatenate([p["attn_W"][:, i] for i in range(4)],
                             axis=-1).astype(jnp.bfloat16)        # (N, D, 4D)
    kernel = functools.partial(encoder_kernel, d_model=D, heads=HEADS,
                               n_layers=N, eps=EPS)
    # TODO(synk): at production sizes on v7x, add a leading "parallel"
    # batch/query-tile grid axis (2 TCs) and set vmem_limit_bytes vs 64 MiB.
    return pl.pallas_call(
        kernel,
        out_shape=jax.ShapeDtypeStruct((B, S, D), jnp.bfloat16),
        grid_spec=pltpu.PrefetchScalarGridSpec(
            num_scalar_prefetch=0,
            grid=(N,),
            in_specs=[
                pl.BlockSpec((B, S, D), lambda l: (0, 0, 0)),        # embedded src
                pl.BlockSpec((B, 1, S), lambda l: (0, 0, 0)),        # additive mask
                pl.BlockSpec((1, 11, D), lambda l: (l, 0, 0)),       # packed vectors
                pl.BlockSpec((1, D, 4 * D), lambda l: (l, 0, 0)),    # [Wq|Wk|Wv|Wo]
                pl.BlockSpec((1, D, DFF), lambda l: (l, 0, 0)),      # ff W1
                pl.BlockSpec((1, 1, DFF), lambda l: (l, 0, 0)),      # ff b1
                pl.BlockSpec((1, DFF, D), lambda l: (l, 0, 0)),      # ff W2
            ],
            out_specs=pl.BlockSpec((B, S, D), lambda l: (0, 0, 0)),  # bf16 e_out
            scratch_shapes=[pltpu.VMEM((B, S, D), jnp.float32)],     # residual state
        ),
        compiler_params=pltpu.CompilerParams(
            dimension_semantics=("arbitrary",)),
    )(x, src_add_mask, packed, w_attn,
      p["ff_W1"].astype(jnp.bfloat16), p["ff_b1"],
      p["ff_W2"].astype(jnp.bfloat16))


def decoder_pallas(x, e_outputs, src_add_mask, trg_add_mask, p, w_out, b_out):
    B, T, D = x.shape
    S = e_outputs.shape[1]
    N = p["attn_W"].shape[0]
    DFF = p["ff_W1"].shape[-1]
    V = w_out.shape[-1]
    packed = _pack_dec_vectors(p)
    # [self Wq|Wk|Wv|Wo | cross Wq|Wk|Wv|Wo] along lanes, bf16.
    w_attn = jnp.concatenate([p["attn_W"][:, i] for i in range(8)],
                             axis=-1).astype(jnp.bfloat16)        # (N, D, 8D)
    kernel = functools.partial(decoder_kernel, d_model=D, heads=HEADS,
                               n_layers=N, eps=EPS)
    return pl.pallas_call(
        kernel,
        out_shape=jax.ShapeDtypeStruct((B, T, V), jnp.float32),
        grid_spec=pltpu.PrefetchScalarGridSpec(
            num_scalar_prefetch=0,
            grid=(N,),
            in_specs=[
                pl.BlockSpec((B, T, D), lambda l: (0, 0, 0)),        # embedded trg
                pl.BlockSpec((B, S, D), lambda l: (0, 0, 0)),        # e_outputs bf16
                pl.BlockSpec((B, 1, S), lambda l: (0, 0, 0)),        # src additive mask
                pl.BlockSpec((B, T, T), lambda l: (0, 0, 0)),        # trg additive mask
                pl.BlockSpec((1, 17, D), lambda l: (l, 0, 0)),       # packed vectors
                pl.BlockSpec((1, D, 8 * D), lambda l: (l, 0, 0)),    # fused attn W
                pl.BlockSpec((1, D, DFF), lambda l: (l, 0, 0)),      # ff W1
                pl.BlockSpec((1, 1, DFF), lambda l: (l, 0, 0)),      # ff b1
                pl.BlockSpec((1, DFF, D), lambda l: (l, 0, 0)),      # ff W2
                pl.BlockSpec((D, V), lambda l: (0, 0)),              # out Linear W
                pl.BlockSpec((1, V), lambda l: (0, 0)),              # out Linear b
            ],
            out_specs=pl.BlockSpec((B, T, V), lambda l: (0, 0, 0)),  # logits
            scratch_shapes=[pltpu.VMEM((B, T, D), jnp.float32)],     # residual state
        ),
        compiler_params=pltpu.CompilerParams(
            dimension_semantics=("arbitrary",)),
    )(x, e_outputs, src_add_mask, trg_add_mask, packed, w_attn,
      p["ff_W1"].astype(jnp.bfloat16), p["ff_b1"],
      p["ff_W2"].astype(jnp.bfloat16),
      w_out.astype(jnp.bfloat16), b_out)


# ----------------------------- JAX glue (embed + PE) ------------------------
# TODO(synk): the nn.Embedding gather stays in plain JAX (XLA gather); a Pallas
# scalar-prefetch gather kernel is not worthwhile at these sizes.
def embed_and_pe(tokens, emb_table, d_model):
    x = emb_table[tokens]                                   # (B, T, D) gather
    T = tokens.shape[1]
    pos = jnp.arange(T, dtype=jnp.float32)[:, None]
    i = jnp.arange(0, d_model, 2, dtype=jnp.float32)        # even indices
    pe_sin = jnp.sin(pos / jnp.power(10000.0, (2.0 * i) / d_model))
    pe_cos = jnp.cos(pos / jnp.power(10000.0, (2.0 * (i + 1.0)) / d_model))
    pe = jnp.stack([pe_sin, pe_cos], axis=-1).reshape(T, d_model)
    return x * math.sqrt(d_model) + pe[None, :, :]          # dropout = identity


# ----------------------------- pure-JAX reference ---------------------------
def _ref_norm(v, alpha, bias, eps=EPS):
    D = v.shape[-1]
    mu = v.mean(-1, keepdims=True)
    d = v - mu
    var = (d * d).sum(-1, keepdims=True) / (D - 1)
    return alpha * d / (jnp.sqrt(var) + eps) + bias


def _ref_mha(q_in, kv_in, mask, W, b, heads):
    D = q_in.shape[-1]
    dk = D // heads
    q = q_in @ W[0] + b[0]
    k = kv_in @ W[1] + b[1]
    v = kv_in @ W[2] + b[2]
    B, Tq, Tk = q.shape[0], q.shape[1], k.shape[1]
    qh = q.reshape(B, Tq, heads, dk).transpose(0, 2, 1, 3)
    kh = k.reshape(B, Tk, heads, dk).transpose(0, 2, 1, 3)
    vh = v.reshape(B, Tk, heads, dk).transpose(0, 2, 1, 3)
    sc = jnp.einsum("bhqd,bhkd->bhqk", qh, kh) / math.sqrt(dk)
    sc = jnp.where(mask[:, None] == 0, -1e9, sc)
    p = jax.nn.softmax(sc, axis=-1)
    o = jnp.einsum("bhqk,bhkd->bhqd", p, vh)
    o = o.transpose(0, 2, 1, 3).reshape(B, Tq, D)
    return o @ W[3] + b[3]


def reference_encoder(x, mask, p, heads, eps=EPS):
    n_layers = p["attn_W"].shape[0]
    for l in range(n_layers):
        x2 = _ref_norm(x, p["norm_alpha"][l, 0], p["norm_bias"][l, 0], eps)
        x = x + _ref_mha(x2, x2, mask, p["attn_W"][l], p["attn_b"][l], heads)
        x2 = _ref_norm(x, p["norm_alpha"][l, 1], p["norm_bias"][l, 1], eps)
        h = jax.nn.relu(x2 @ p["ff_W1"][l] + p["ff_b1"][l][0])
        x = x + (h @ p["ff_W2"][l] + p["ff_b2"][l][0])
    return _ref_norm(x, p["final_alpha"][0], p["final_bias"][0], eps)


def reference_decoder(x, e, src_mask, trg_mask, p, heads, eps=EPS):
    D = x.shape[-1]
    n_layers = p["attn_W"].shape[0]
    for l in range(n_layers):
        aw = p["attn_W"][l].reshape(2, 4, D, D)
        ab = p["attn_b"][l].reshape(2, 4, D)
        x2 = _ref_norm(x, p["norm_alpha"][l, 0], p["norm_bias"][l, 0], eps)
        x = x + _ref_mha(x2, x2, trg_mask, aw[0], ab[0], heads)
        x2 = _ref_norm(x, p["norm_alpha"][l, 1], p["norm_bias"][l, 1], eps)
        x = x + _ref_mha(x2, e, src_mask, aw[1], ab[1], heads)
        x2 = _ref_norm(x, p["norm_alpha"][l, 2], p["norm_bias"][l, 2], eps)
        h = jax.nn.relu(x2 @ p["ff_W1"][l] + p["ff_b1"][l][0])
        x = x + (h @ p["ff_W2"][l] + p["ff_b2"][l][0])
    return _ref_norm(x, p["final_alpha"][0], p["final_bias"][0], eps)


# ------------------------------- parameters ----------------------------------
def init_params(key):
    ks = jax.random.split(key, 24)

    def gauss(k, shape, scale):
        return (jax.random.normal(k, shape) * scale).astype(jnp.float32)

    enc = {
        "emb": gauss(ks[0], (SRC_VOCAB, D_MODEL), 0.1),
        "norm_alpha": 1.0 + gauss(ks[1], (N_LAYERS, 2, D_MODEL), 0.1),
        "norm_bias": gauss(ks[2], (N_LAYERS, 2, D_MODEL), 0.1),
        "attn_W": gauss(ks[3], (N_LAYERS, 4, D_MODEL, D_MODEL),
                        1.0 / math.sqrt(D_MODEL)),
        "attn_b": gauss(ks[4], (N_LAYERS, 4, D_MODEL), 0.02),
        "ff_W1": gauss(ks[5], (N_LAYERS, D_MODEL, D_FF), 1.0 / math.sqrt(D_MODEL)),
        "ff_b1": gauss(ks[6], (N_LAYERS, 1, D_FF), 0.02),
        "ff_W2": gauss(ks[7], (N_LAYERS, D_FF, D_MODEL), 1.0 / math.sqrt(D_FF)),
        "ff_b2": gauss(ks[8], (N_LAYERS, 1, D_MODEL), 0.02),
        "final_alpha": 1.0 + gauss(ks[9], (1, D_MODEL), 0.1),
        "final_bias": gauss(ks[10], (1, D_MODEL), 0.1),
    }
    dec = {
        "emb": gauss(ks[11], (TRG_VOCAB, D_MODEL), 0.1),
        "norm_alpha": 1.0 + gauss(ks[12], (N_LAYERS, 3, D_MODEL), 0.1),
        "norm_bias": gauss(ks[13], (N_LAYERS, 3, D_MODEL), 0.1),
        "attn_W": gauss(ks[14], (N_LAYERS, 8, D_MODEL, D_MODEL),
                        1.0 / math.sqrt(D_MODEL)),
        "attn_b": gauss(ks[15], (N_LAYERS, 8, D_MODEL), 0.02),
        "ff_W1": gauss(ks[16], (N_LAYERS, D_MODEL, D_FF), 1.0 / math.sqrt(D_MODEL)),
        "ff_b1": gauss(ks[17], (N_LAYERS, 1, D_FF), 0.02),
        "ff_W2": gauss(ks[18], (N_LAYERS, D_FF, D_MODEL), 1.0 / math.sqrt(D_FF)),
        "ff_b2": gauss(ks[19], (N_LAYERS, 1, D_MODEL), 0.02),
        "final_alpha": 1.0 + gauss(ks[20], (1, D_MODEL), 0.1),
        "final_bias": gauss(ks[21], (1, D_MODEL), 0.1),
    }
    out = {
        "W": gauss(ks[22], (D_MODEL, TRG_VOCAB), 1.0 / math.sqrt(D_MODEL)),
        "b": gauss(ks[23], (1, TRG_VOCAB), 0.02),
    }
    return enc, dec, out


# ----------------------------------- main ------------------------------------
if __name__ == "__main__":
    key = jax.random.PRNGKey(0)
    pkey, skey, tkey = jax.random.split(key, 3)
    enc_p, dec_p, out_p = init_params(pkey)

    src = jax.random.randint(skey, (BATCH, S_SRC), 0, SRC_VOCAB)
    trg = jax.random.randint(tkey, (BATCH, T_TRG), 0, TRG_VOCAB)
    src_mask = jnp.ones((BATCH, 1, S_SRC), jnp.int32)
    trg_mask = jnp.broadcast_to(
        jnp.tril(jnp.ones((T_TRG, T_TRG), jnp.int32))[None],
        (BATCH, T_TRG, T_TRG))

    # Precompute additive 0/-1e9 float masks ONCE in the wrapper (review item).
    src_add = jnp.where(src_mask == 0, jnp.float32(-1e9), jnp.float32(0.0))
    trg_add = jnp.where(trg_mask == 0, jnp.float32(-1e9), jnp.float32(0.0))

    # Embedding + positional encoding (JAX glue), then the Pallas kernels.
    # TODO(synk): BlosumEncoder branch omitted - Transformer constructs the
    # Encoder without blosum.
    x_src = embed_and_pe(src, enc_p["emb"], D_MODEL).astype(jnp.float32)
    x_trg = embed_and_pe(trg, dec_p["emb"], D_MODEL).astype(jnp.float32)

    e_out = encoder_pallas(x_src, src_add, enc_p)              # bf16 (B,S,D)
    logits = decoder_pallas(x_trg, e_out, src_add, trg_add, dec_p,
                            out_p["W"], out_p["b"])
    e_out, logits = jax.block_until_ready((e_out, logits))

    # Correctness check against a pure-JAX reference of the same math.
    e_ref = reference_encoder(x_src, src_mask, enc_p, HEADS)
    d_ref = reference_decoder(x_trg, e_ref, src_mask, trg_mask, dec_p, HEADS)
    logits_ref = d_ref @ out_p["W"] + out_p["b"][0]

    np.testing.assert_allclose(np.asarray(e_out.astype(jnp.float32)),
                               np.asarray(e_ref), rtol=3e-2, atol=3e-2)
    np.testing.assert_allclose(np.asarray(logits), np.asarray(logits_ref),
                               rtol=3e-2, atol=3e-2)
    print("KERNEL_OK")
</pallas_src>

<mosaic_0001>
module attributes {stable_mosaic.version = 11 : i64} {
  func.func @encoder_kernel(%arg0: i32, %arg1: memref<2x8x128xf32, #tpu.memory_space<vmem>>, %arg2: memref<2x1x8xf32, #tpu.memory_space<vmem>>, %arg3: memref<1x11x128xf32, #tpu.memory_space<vmem>>, %arg4: memref<1x128x512xbf16, #tpu.memory_space<vmem>>, %arg5: memref<1x128x256xbf16, #tpu.memory_space<vmem>>, %arg6: memref<1x1x256xf32, #tpu.memory_space<vmem>>, %arg7: memref<1x256x128xbf16, #tpu.memory_space<vmem>>, %arg8: memref<2x8x128xbf16, #tpu.memory_space<vmem>>, %arg9: memref<2x8x128xf32, #tpu.memory_space<vmem>>) attributes {dimension_semantics = [#tpu.dimension_semantics<arbitrary>], iteration_bounds = array<i64: 2>, scalar_prefetch = 0 : i64, scratch_operands = 1 : i64, tpu.core_type = #tpu.core_type<tc>, window_params = [{pipeline_mode = #tpu.pipeline_mode<synchronous>, transform_indices = @transform_0, window_bounds = array<i64: 2, 8, 128>}, {pipeline_mode = #tpu.pipeline_mode<synchronous>, transform_indices = @transform_1, window_bounds = array<i64: 2, 1, 8>}, {transform_indices = @transform_2, window_bounds = array<i64: 1, 11, 128>}, {transform_indices = @transform_3, window_bounds = array<i64: 1, 128, 512>}, {transform_indices = @transform_4, window_bounds = array<i64: 1, 128, 256>}, {transform_indices = @transform_5, window_bounds = array<i64: 1, 1, 256>}, {transform_indices = @transform_6, window_bounds = array<i64: 1, 256, 128>}, {pipeline_mode = #tpu.pipeline_mode<synchronous>, transform_indices = @transform_7, window_bounds = array<i64: 2, 8, 128>}]} {
    %c0_i32 = arith.constant 0 : i32
    %0 = arith.cmpi eq, %arg0, %c0_i32 : i32
    %1 = arith.extui %0 : i1 to i32
    %c0_i32_0 = arith.constant 0 : i32
    %2 = arith.cmpi ne, %1, %c0_i32_0 : i32
    scf.if %2 {
      %c0_61 = arith.constant 0 : index
      %c0_62 = arith.constant 0 : index
      %c0_63 = arith.constant 0 : index
      %195 = vector.load %arg1[%c0_61, %c0_62, %c0_63] : memref<2x8x128xf32, #tpu.memory_space<vmem>>, vector<2x8x128xf32>
      %c0_64 = arith.constant 0 : index
      %c0_65 = arith.constant 0 : index
      %c0_66 = arith.constant 0 : index
      %196 = vector.load %arg9[%c0_64, %c0_65, %c0_66] : memref<2x8x128xf32, #tpu.memory_space<vmem>>, vector<2x8x128xf32>
      tpu.vector_store %arg9[%c0_64, %c0_65, %c0_66], %195 {strides = array<i32>} : memref<2x8x128xf32, #tpu.memory_space<vmem>>, vector<2x8x128xf32>,
    } else {
    }
    %c0 = arith.constant 0 : index
    %c0_1 = arith.constant 0 : index
    %c0_2 = arith.constant 0 : index
    %3 = vector.load %arg9[%c0, %c0_1, %c0_2] : memref<2x8x128xf32, #tpu.memory_space<vmem>>, vector<2x8x128xf32>
    %c0_3 = arith.constant 0 : index
    %c0_4 = arith.constant 0 : index
    %c0_5 = arith.constant 0 : index
    %4 = vector.load %arg2[%c0_3, %c0_4, %c0_5] : memref<2x1x8xf32, #tpu.memory_space<vmem>>, vector<2x1x8xf32>
    %c0_6 = arith.constant 0 : index
    %c0_7 = arith.constant 0 : index
    %c0_8 = arith.constant 0 : index
    %5 = vector.load %arg3[%c0_6, %c0_7, %c0_8] : memref<1x11x128xf32, #tpu.memory_space<vmem>>, vector<1x11x128xf32>
    %6 = vector.shape_cast %5 : vector<1x11x128xf32> to vector<11x128xf32>
    %7 = vector.extract_strided_slice %6 {offsets = [0, 0], sizes = [1, 128], strides = [1, 1]} : vector<11x128xf32> to vector<1x128xf32>
    %8 = vector.extract_strided_slice %6 {offsets = [2, 0], sizes = [1, 128], strides = [1, 1]} : vector<11x128xf32> to vector<1x128xf32>
    %cst = arith.constant dense<0.000000e+00> : vector<2x8xf32>
    %9 = vector.multi_reduction <add>, %3, %cst [2] : vector<2x8x128xf32> to vector<2x8xf32>
    %10 = vector.shape_cast %9 : vector<2x8xf32> to vector<2x8x1xf32>
    %cst_9 = arith.constant 1.280000e+02 : f32
    %11 = vector.broadcast %cst_9 : f32 to vector<2x8x1xf32>
    %12 = arith.divf %10, %11 : vector<2x8x1xf32>
    %13 = vector.broadcast %12 : vector<2x8x1xf32> to vector<2x8x128xf32>
    %14 = arith.subf %3, %13 : vector<2x8x128xf32>
    %15 = arith.mulf %14, %14 : vector<2x8x128xf32>
    %cst_10 = arith.constant dense<0.000000e+00> : vector<2x8xf32>
    %16 = vector.multi_reduction <add>, %15, %cst_10 [2] : vector<2x8x128xf32> to vector<2x8xf32>
    %17 = vector.shape_cast %16 : vector<2x8xf32> to vector<2x8x1xf32>
    %cst_11 = arith.constant 0.00787401571 : f32
    %18 = vector.broadcast %cst_11 : f32 to vector<2x8x1xf32>
    %19 = arith.mulf %17, %18 : vector<2x8x1xf32>
    %20 = math.sqrt %19 : vector<2x8x1xf32>
    %cst_12 = arith.constant 9.99999997E-7 : f32
    %21 = vector.broadcast %cst_12 : f32 to vector<2x8x1xf32>
    %22 = arith.addf %20, %21 : vector<2x8x1xf32>
    %23 = tpu.reciprocal %22 {approx = true} : vector<2x8x1xf32> -> vector<2x8x1xf32>
    %24 = vector.broadcast %23 : vector<2x8x1xf32> to vector<2x8x128xf32>
    %25 = arith.mulf %14, %24 : vector<2x8x128xf32>
    %26 = vector.shape_cast %7 : vector<1x128xf32> to vector<1x1x128xf32>
    %27 = vector.broadcast %26 : vector<1x1x128xf32> to vector<2x8x128xf32>
    %28 = arith.mulf %27, %25 : vector<2x8x128xf32>
    %29 = vector.shape_cast %8 : vector<1x128xf32> to vector<1x1x128xf32>
    %30 = vector.broadcast %29 : vector<1x1x128xf32> to vector<2x8x128xf32>
    %31 = arith.addf %28, %30 : vector<2x8x128xf32>
    %c0_13 = arith.constant 0 : index
    %c0_14 = arith.constant 0 : index
    %c0_15 = arith.constant 0 : index
    %32 = vector.load %arg4[%c0_13, %c0_14, %c0_15] : memref<1x128x512xbf16, #tpu.memory_space<vmem>>, vector<1x128x384xbf16>
    %33 = vector.shape_cast %32 : vector<1x128x384xbf16> to vector<128x384xbf16>
    %c0_16 = arith.constant 0 : index
    %c0_17 = arith.constant 0 : index
    %c384 = arith.constant 384 : index
    %34 = vector.load %arg4[%c0_16, %c0_17, %c384] : memref<1x128x512xbf16, #tpu.memory_space<vmem>>, vector<1x128x128xbf16>
    %35 = vector.shape_cast %34 : vector<1x128x128xbf16> to vector<128x128xbf16>
    %36 = vector.extract_strided_slice %6 {offsets = [4, 0], sizes = [1, 128], strides = [1, 1]} : vector<11x128xf32> to vector<1x128xf32>
    %37 = vector.extract_strided_slice %6 {offsets = [5, 0], sizes = [1, 128], strides = [1, 1]} : vector<11x128xf32> to vector<1x128xf32>
    %38 = vector.extract_strided_slice %6 {offsets = [6, 0], sizes = [1, 128], strides = [1, 1]} : vector<11x128xf32> to vector<1x128xf32>
    %39 = vector.extract_strided_slice %6 {offsets = [7, 0], sizes = [1, 128], strides = [1, 1]} : vector<11x128xf32> to vector<1x128xf32>
    %40 = vector.shape_cast %31 : vector<2x8x128xf32> to vector<16x128xf32>
    %41 = arith.truncf %40 : vector<16x128xf32> to vector<16x128xbf16>
    %cst_18 = arith.constant dense<0.000000e+00> : vector<16x384xf32>
    %42 = tpu.matmul %41, %33, %cst_18 {dimension_numbers = #tpu.dot_dimension_numbers<[1], [0], [0], [1], [0, 0, 1, 1], [], []>} : vector<16x128xbf16>, vector<128x384xbf16>, vector<16x384xf32> -> vector<16x384xf32>
    %43 = vector.extract_strided_slice %42 {offsets = [0, 0], sizes = [16, 128], strides = [1, 1]} : vector<16x384xf32> to vector<16x128xf32>
    %44 = vector.broadcast %36 : vector<1x128xf32> to vector<16x128xf32>
    %45 = arith.addf %43, %44 : vector<16x128xf32>
    %46 = arith.truncf %45 : vector<16x128xf32> to vector<16x128xbf16>
    %47 = vector.shape_cast %46 : vector<16x128xbf16> to vector<2x8x128xbf16>
    %48 = vector.extract_strided_slice %42 {offsets = [0, 128], sizes = [16, 128], strides = [1, 1]} : vector<16x384xf32> to vector<16x128xf32>
    %49 = vector.broadcast %37 : vector<1x128xf32> to vector<16x128xf32>
    %50 = arith.addf %48, %49 : vector<16x128xf32>
    %51 = arith.truncf %50 : vector<16x128xf32> to vector<16x128xbf16>
    %52 = vector.shape_cast %51 : vector<16x128xbf16> to vector<2x8x128xbf16>
    %53 = vector.extract_strided_slice %42 {offsets = [0, 256], sizes = [16, 128], strides = [1, 1]} : vector<16x384xf32> to vector<16x128xf32>
    %54 = vector.broadcast %38 : vector<1x128xf32> to vector<16x128xf32>
    %55 = arith.addf %53, %54 : vector<16x128xf32>
    %56 = arith.truncf %55 : vector<16x128xf32> to vector<16x128xbf16>
    %57 = vector.shape_cast %56 : vector<16x128xbf16> to vector<2x8x128xbf16>
    %58 = vector.extract_strided_slice %47 {offsets = [0, 0, 0], sizes = [2, 8, 32], strides = [1, 1, 1]} : vector<2x8x128xbf16> to vector<2x8x32xbf16>
    %59 = vector.extract_strided_slice %52 {offsets = [0, 0, 0], sizes = [2, 8, 32], strides = [1, 1, 1]} : vector<2x8x128xbf16> to vector<2x8x32xbf16>
    "tpu.trace_start"() <{level = 10 : i32, message = "bqd,bkd->bqk"}> : () -> ()
    %cst_19 = arith.constant dense<0.000000e+00> : vector<2x8x8xf32>
    %60 = tpu.matmul %58, %59, %cst_19 {dimension_numbers = #tpu.dot_dimension_numbers<[2], [2], [1], [1], [0, 0, 0, 1, 1, 1], [0], [0]>} : vector<2x8x32xbf16>, vector<2x8x32xbf16>, vector<2x8x8xf32> -> vector<2x8x8xf32>
    "tpu.trace_stop"() : () -> ()
    %cst_20 = arith.constant 0.176776692 : f32
    %61 = vector.broadcast %cst_20 : f32 to vector<2x8x8xf32>
    %62 = arith.mulf %60, %61 : vector<2x8x8xf32>
    %63 = vector.broadcast %4 : vector<2x1x8xf32> to vector<2x8x8xf32>
    %64 = arith.addf %62, %63 : vector<2x8x8xf32>
    %cst_21 = arith.constant dense<0xFF800000> : vector<2x8xf32>
    %65 = vector.multi_reduction <maximumf>, %64, %cst_21 [2] : vector<2x8x8xf32> to vector<2x8xf32>
    %66 = vector.shape_cast %65 : vector<2x8xf32> to vector<2x8x1xf32>
    %67 = vector.broadcast %66 : vector<2x8x1xf32> to vector<2x8x8xf32>
    %68 = arith.subf %64, %67 : vector<2x8x8xf32>
    %69 = math.exp %68 : vector<2x8x8xf32>
    %cst_22 = arith.constant dense<0.000000e+00> : vector<2x8xf32>
    %70 = vector.multi_reduction <add>, %69, %cst_22 [2] : vector<2x8x8xf32> to vector<2x8xf32>
    %71 = vector.shape_cast %70 : vector<2x8xf32> to vector<2x8x1xf32>
    %72 = tpu.reciprocal %71 {approx = true} : vector<2x8x1xf32> -> vector<2x8x1xf32>
    %73 = vector.broadcast %72 : vector<2x8x1xf32> to vector<2x8x8xf32>
    %74 = arith.mulf %69, %73 : vector<2x8x8xf32>
    %75 = arith.truncf %74 : vector<2x8x8xf32> to vector<2x8x8xbf16>
    %76 = vector.extract_strided_slice %57 {offsets = [0, 0, 0], sizes = [2, 8, 32], strides = [1, 1, 1]} : vector<2x8x128xbf16> to vector<2x8x32xbf16>
    "tpu.trace_start"() <{level = 10 : i32, message = "bqk,bkd->bqd"}> : () -> ()
    %cst_23 = arith.constant dense<0.000000e+00> : vector<2x8x32xf32>
    %77 = tpu.matmul %75, %76, %cst_23 {dimension_numbers = #tpu.dot_dimension_numbers<[2], [1], [1], [2], [0, 0, 0, 1, 1, 2], [0], [0]>} : vector<2x8x8xbf16>, vector<2x8x32xbf16>, vector<2x8x32xf32> -> vector<2x8x32xf32>
    "tpu.trace_stop"() : () -> ()
    %78 = vector.extract_strided_slice %47 {offsets = [0, 0, 32], sizes = [2, 8, 32], strides = [1, 1, 1]} : vector<2x8x128xbf16> to vector<2x8x32xbf16>
    %79 = vector.extract_strided_slice %52 {offsets = [0, 0, 32], sizes = [2, 8, 32], strides = [1, 1, 1]} : vector<2x8x128xbf16> to vector<2x8x32xbf16>
    "tpu.trace_start"() <{level = 10 : i32, message = "bqd,bkd->bqk"}> : () -> ()
    %cst_24 = arith.constant dense<0.000000e+00> : vector<2x8x8xf32>
    %80 = tpu.matmul %78, %79, %cst_24 {dimension_numbers = #tpu.dot_dimension_numbers<[2], [2], [1], [1], [0, 0, 0, 1, 1, 1], [0], [0]>} : vector<2x8x32xbf16>, vector<2x8x32xbf16>, vector<2x8x8xf32> -> vector<2x8x8xf32>
    "tpu.trace_stop"() : () -> ()
    %cst_25 = arith.constant 0.176776692 : f32
    %81 = vector.broadcast %cst_25 : f32 to vector<2x8x8xf32>
    %82 = arith.mulf %80, %81 : vector<2x8x8xf32>
    %83 = vector.broadcast %4 : vector<2x1x8xf32> to vector<2x8x8xf32>
    %84 = arith.addf %82, %83 : vector<2x8x8xf32>
    %cst_26 = arith.constant dense<0xFF800000> : vector<2x8xf32>
    %85 = vector.multi_reduction <maximumf>, %84, %cst_26 [2] : vector<2x8x8xf32> to vector<2x8xf32>
    %86 = vector.shape_cast %85 : vector<2x8xf32> to vector<2x8x1xf32>
    %87 = vector.broadcast %86 : vector<2x8x1xf32> to vector<2x8x8xf32>
    %88 = arith.subf %84, %87 : vector<2x8x8xf32>
    %89 = math.exp %88 : vector<2x8x8xf32>
    %cst_27 = arith.constant dense<0.000000e+00> : vector<2x8xf32>
    %90 = vector.multi_reduction <add>, %89, %cst_27 [2] : vector<2x8x8xf32> to vector<2x8xf32>
    %91 = vector.shape_cast %90 : vector<2x8xf32> to vector<2x8x1xf32>
    %92 = tpu.reciprocal %91 {approx = true} : vector<2x8x1xf32> -> vector<2x8x1xf32>
    %93 = vector.broadcast %92 : vector<2x8x1xf32> to vector<2x8x8xf32>
    %94 = arith.mulf %89, %93 : vector<2x8x8xf32>
    %95 = arith.truncf %94 : vector<2x8x8xf32> to vector<2x8x8xbf16>
    %96 = vector.extract_strided_slice %57 {offsets = [0, 0, 32], sizes = [2, 8, 32], strides = [1, 1, 1]} : vector<2x8x128xbf16> to vector<2x8x32xbf16>
    "tpu.trace_start"() <{level = 10 : i32, message = "bqk,bkd->bqd"}> : () -> ()
    %cst_28 = arith.constant dense<0.000000e+00> : vector<2x8x32xf32>
    %97 = tpu.matmul %95, %96, %cst_28 {dimension_numbers = #tpu.dot_dimension_numbers<[2], [1], [1], [2], [0, 0, 0, 1, 1, 2], [0], [0]>} : vector<2x8x8xbf16>, vector<2x8x32xbf16>, vector<2x8x32xf32> -> vector<2x8x32xf32>
    "tpu.trace_stop"() : () -> ()
    %98 = vector.extract_strided_slice %47 {offsets = [0, 0, 64], sizes = [2, 8, 32], strides = [1, 1, 1]} : vector<2x8x128xbf16> to vector<2x8x32xbf16>
    %99 = vector.extract_strided_slice %52 {offsets = [0, 0, 64], sizes = [2, 8, 32], strides = [1, 1, 1]} : vector<2x8x128xbf16> to vector<2x8x32xbf16>
    "tpu.trace_start"() <{level = 10 : i32, message = "bqd,bkd->bqk"}> : () -> ()
    %cst_29 = arith.constant dense<0.000000e+00> : vector<2x8x8xf32>
    %100 = tpu.matmul %98, %99, %cst_29 {dimension_numbers = #tpu.dot_dimension_numbers<[2], [2], [1], [1], [0, 0, 0, 1, 1, 1], [0], [0]>} : vector<2x8x32xbf16>, vector<2x8x32xbf16>, vector<2x8x8xf32> -> vector<2x8x8xf32>
    "tpu.trace_stop"() : () -> ()
    %cst_30 = arith.constant 0.176776692 : f32
    %101 = vector.broadcast %cst_30 : f32 to vector<2x8x8xf32>
    %102 = arith.mulf %100, %101 : vector<2x8x8xf32>
    %103 = vector.broadcast %4 : vector<2x1x8xf32> to vector<2x8x8xf32>
    %104 = arith.addf %102, %103 : vector<2x8x8xf32>
    %cst_31 = arith.constant dense<0xFF800000> : vector<2x8xf32>
    %105 = vector.multi_reduction <maximumf>, %104, %cst_31 [2] : vector<2x8x8xf32> to vector<2x8xf32>
    %106 = vector.shape_cast %105 : vector<2x8xf32> to vector<2x8x1xf32>
    %107 = vector.broadcast %106 : vector<2x8x1xf32> to vector<2x8x8xf32>
    %108 = arith.subf %104, %107 : vector<2x8x8xf32>
    %109 = math.exp %108 : vector<2x8x8xf32>
    %cst_32 = arith.constant dense<0.000000e+00> : vector<2x8xf32>
    %110 = vector.multi_reduction <add>, %109, %cst_32 [2] : vector<2x8x8xf32> to vector<2x8xf32>
    %111 = vector.shape_cast %110 : vector<2x8xf32> to vector<2x8x1xf32>
    %112 = tpu.reciprocal %111 {approx = true} : vector<2x8x1xf32> -> vector<2x8x1xf32>
    %113 = vector.broadcast %112 : vector<2x8x1xf32> to vector<2x8x8xf32>
    %114 = arith.mulf %109, %113 : vector<2x8x8xf32>
    %115 = arith.truncf %114 : vector<2x8x8xf32> to vector<2x8x8xbf16>
    %116 = vector.extract_strided_slice %57 {offsets = [0, 0, 64], sizes = [2, 8, 32], strides = [1, 1, 1]} : vector<2x8x128xbf16> to vector<2x8x32xbf16>
    "tpu.trace_start"() <{level = 10 : i32, message = "bqk,bkd->bqd"}> : () -> ()
    %cst_33 = arith.constant dense<0.000000e+00> : vector<2x8x32xf32>
    %117 = tpu.matmul %115, %116, %cst_33 {dimension_numbers = #tpu.dot_dimension_numbers<[2], [1], [1], [2], [0, 0, 0, 1, 1, 2], [0], [0]>} : vector<2x8x8xbf16>, vector<2x8x32xbf16>, vector<2x8x32xf32> -> vector<2x8x32xf32>
    "tpu.trace_stop"() : () -> ()
    %118 = vector.extract_strided_slice %47 {offsets = [0, 0, 96], sizes = [2, 8, 32], strides = [1, 1, 1]} : vector<2x8x128xbf16> to vector<2x8x32xbf16>
    %119 = vector.extract_strided_slice %52 {offsets = [0, 0, 96], sizes = [2, 8, 32], strides = [1, 1, 1]} : vector<2x8x128xbf16> to vector<2x8x32xbf16>
    "tpu.trace_start"() <{level = 10 : i32, message = "bqd,bkd->bqk"}> : () -> ()
    %cst_34 = arith.constant dense<0.000000e+00> : vector<2x8x8xf32>
    %120 = tpu.matmul %118, %119, %cst_34 {dimension_numbers = #tpu.dot_dimension_numbers<[2], [2], [1], [1], [0, 0, 0, 1, 1, 1], [0], [0]>} : vector<2x8x32xbf16>, vector<2x8x32xbf16>, vector<2x8x8xf32> -> vector<2x8x8xf32>
    "tpu.trace_stop"() : () -> ()
    %cst_35 = arith.constant 0.176776692 : f32
    %121 = vector.broadcast %cst_35 : f32 to vector<2x8x8xf32>
    %122 = arith.mulf %120, %121 : vector<2x8x8xf32>
    %123 = vector.broadcast %4 : vector<2x1x8xf32> to vector<2x8x8xf32>
    %124 = arith.addf %122, %123 : vector<2x8x8xf32>
    %cst_36 = arith.constant dense<0xFF800000> : vector<2x8xf32>
    %125 = vector.multi_reduction <maximumf>, %124, %cst_36 [2] : vector<2x8x8xf32> to vector<2x8xf32>
    %126 = vector.shape_cast %125 : vector<2x8xf32> to vector<2x8x1xf32>
    %127 = vector.broadcast %126 : vector<2x8x1xf32> to vector<2x8x8xf32>
    %128 = arith.subf %124, %127 : vector<2x8x8xf32>
    %129 = math.exp %128 : vector<2x8x8xf32>
    %cst_37 = arith.constant dense<0.000000e+00> : vector<2x8xf32>
    %130 = vector.multi_reduction <add>, %129, %cst_37 [2] : vector<2x8x8xf32> to vector<2x8xf32>
    %131 = vector.shape_cast %130 : vector<2x8xf32> to vector<2x8x1xf32>
    %132 = tpu.reciprocal %131 {approx = true} : vector<2x8x1xf32> -> vector<2x8x1xf32>
    %133 = vector.broadcast %132 : vector<2x8x1xf32> to vector<2x8x8xf32>
    %134 = arith.mulf %129, %133 : vector<2x8x8xf32>
    %135 = arith.truncf %134 : vector<2x8x8xf32> to vector<2x8x8xbf16>
    %136 = vector.extract_strided_slice %57 {offsets = [0, 0, 96], sizes = [2, 8, 32], strides = [1, 1, 1]} : vector<2x8x128xbf16> to vector<2x8x32xbf16>
    "tpu.trace_start"() <{level = 10 : i32, message = "bqk,bkd->bqd"}> : () -> ()
    %cst_38 = arith.constant dense<0.000000e+00> : vector<2x8x32xf32>
    %137 = tpu.matmul %135, %136, %cst_38 {dimension_numbers = #tpu.dot_dimension_numbers<[2], [1], [1], [2], [0, 0, 0, 1, 1, 2], [0], [0]>} : vector<2x8x8xbf16>, vector<2x8x32xbf16>, vector<2x8x32xf32> -> vector<2x8x32xf32>
    "tpu.trace_stop"() : () -> ()
    %138 = tpu.concatenate %77, %97, %117, %137 in 2 : vector<2x8x32xf32>, vector<2x8x32xf32>, vector<2x8x32xf32>, vector<2x8x32xf32> -> vector<2x8x128xf32>
    %139 = vector.shape_cast %138 : vector<2x8x128xf32> to vector<16x128xf32>
    %140 = arith.truncf %139 : vector<16x128xf32> to vector<16x128xbf16>
    %cst_39 = arith.constant dense<0.000000e+00> : vector<16x128xf32>
    %141 = tpu.matmul %140, %35, %cst_39 {dimension_numbers = #tpu.dot_dimension_numbers<[1], [0], [0], [1], [0, 0, 1, 1], [], []>} : vector<16x128xbf16>, vector<128x128xbf16>, vector<16x128xf32> -> vector<16x128xf32>
    %142 = vector.broadcast %39 : vector<1x128xf32> to vector<16x128xf32>
    %143 = arith.addf %141, %142 : vector<16x128xf32>
    %144 = vector.shape_cast %143 : vector<16x128xf32> to vector<2x8x128xf32>
    %145 = arith.addf %3, %144 : vector<2x8x128xf32>
    %146 = vector.extract_strided_slice %6 {offsets = [1, 0], sizes = [1, 128], strides = [1, 1]} : vector<11x128xf32> to vector<1x128xf32>
    %147 = vector.extract_strided_slice %6 {offsets = [3, 0], sizes = [1, 128], strides = [1, 1]} : vector<11x128xf32> to vector<1x128xf32>
    %cst_40 = arith.constant dense<0.000000e+00> : vector<2x8xf32>
    %148 = vector.multi_reduction <add>, %145, %cst_40 [2] : vector<2x8x128xf32> to vector<2x8xf32>
    %149 = vector.shape_cast %148 : vector<2x8xf32> to vector<2x8x1xf32>
    %cst_41 = arith.constant 1.280000e+02 : f32
    %150 = vector.broadcast %cst_41 : f32 to vector<2x8x1xf32>
    %151 = arith.divf %149, %150 : vector<2x8x1xf32>
    %152 = vector.broadcast %151 : vector<2x8x1xf32> to vector<2x8x128xf32>
    %153 = arith.subf %145, %152 : vector<2x8x128xf32>
    %154 = arith.mulf %153, %153 : vector<2x8x128xf32>
    %cst_42 = arith.constant dense<0.000000e+00> : vector<2x8xf32>
    %155 = vector.multi_reduction <add>, %154, %cst_42 [2] : vector<2x8x128xf32> to vector<2x8xf32>
    %156 = vector.shape_cast %155 : vector<2x8xf32> to vector<2x8x1xf32>
    %cst_43 = arith.constant 0.00787401571 : f32
    %157 = vector.broadcast %cst_43 : f32 to vector<2x8x1xf32>
    %158 = arith.mulf %156, %157 : vector<2x8x1xf32>
    %159 = math.sqrt %158 : vector<2x8x1xf32>
    %cst_44 = arith.constant 9.99999997E-7 : f32
    %160 = vector.broadcast %cst_44 : f32 to vector<2x8x1xf32>
    %161 = arith.addf %159, %160 : vector<2x8x1xf32>
    %162 = tpu.reciprocal %161 {approx = true} : vector<2x8x1xf32> -> vector<2x8x1xf32>
    %163 = vector.broadcast %162 : vector<2x8x1xf32> to vector<2x8x128xf32>
    %164 = arith.mulf %153, %163 : vector<2x8x128xf32>
    %165 = vector.shape_cast %146 : vector<1x128xf32> to vector<1x1x128xf32>
    %166 = vector.broadcast %165 : vector<1x1x128xf32> to vector<2x8x128xf32>
    %167 = arith.mulf %166, %164 : vector<2x8x128xf32>
    %168 = vector.shape_cast %147 : vector<1x128xf32> to vector<1x1x128xf32>
    %169 = vector.broadcast %168 : vector<1x1x128xf32> to vector<2x8x128xf32>
    %170 = arith.addf %167, %169 : vector<2x8x128xf32>
    %171 = vector.shape_cast %170 : vector<2x8x128xf32> to vector<16x128xf32>
    %c0_45 = arith.constant 0 : index
    %c0_46 = arith.constant 0 : index
    %c0_47 = arith.constant 0 : index
    %172 = vector.load %arg5[%c0_45, %c0_46, %c0_47] : memref<1x128x256xbf16, #tpu.memory_space<vmem>>, vector<1x128x256xbf16>
    %173 = vector.shape_cast %172 : vector<1x128x256xbf16> to vector<128x256xbf16>
    %174 = arith.truncf %171 : vector<16x128xf32> to vector<16x128xbf16>
    %cst_48 = arith.constant dense<0.000000e+00> : vector<16x256xf32>
    %175 = tpu.matmul %174, %173, %cst_48 {dimension_numbers = #tpu.dot_dimension_numbers<[1], [0], [0], [1], [0, 0, 1, 1], [], []>} : vector<16x128xbf16>, vector<128x256xbf16>, vector<16x256xf32> -> vector<16x256xf32>
    %c0_49 = arith.constant 0 : index
    %c0_50 = arith.constant 0 : index
    %c0_51 = arith.constant 0 : index
    %176 = vector.load %arg6[%c0_49, %c0_50, %c0_51] : memref<1x1x256xf32, #tpu.memory_space<vmem>>, vector<1x1x256xf32>
    %177 = vector.shape_cast %176 : vector<1x1x256xf32> to vector<1x256xf32>
    %178 = vector.broadcast %177 : vector<1x256xf32> to vector<16x256xf32>
    %179 = arith.addf %175, %178 : vector<16x256xf32>
    %cst_52 = arith.constant 0.000000e+00 : f32
    %180 = vector.broadcast %cst_52 : f32 to vector<16x256xf32>
    %181 = arith.maximumf %179, %180 : vector<16x256xf32>
    %c0_53 = arith.constant 0 : index
    %c0_54 = arith.constant 0 : index
    %c0_55 = arith.constant 0 : index
    %182 = vector.load %arg7[%c0_53, %c0_54, %c0_55] : memref<1x256x128xbf16, #tpu.memory_space<vmem>>, vector<1x256x128xbf16>
    %183 = vector.shape_cast %182 : vector<1x256x128xbf16> to vector<256x128xbf16>
    %184 = arith.truncf %181 : vector<16x256xf32> to vector<16x256xbf16>
    %cst_56 = arith.constant dense<0.000000e+00> : vector<16x128xf32>
    %185 = tpu.matmul %184, %183, %cst_56 {dimension_numbers = #tpu.dot_dimension_numbers<[1], [0], [0], [1], [0, 0, 1, 1], [], []>} : vector<16x256xbf16>, vector<256x128xbf16>, vector<16x128xf32> -> vector<16x128xf32>
    %186 = vector.extract_strided_slice %6 {offsets = [8, 0], sizes = [1, 128], strides = [1, 1]} : vector<11x128xf32> to vector<1x128xf32>
    %187 = vector.broadcast %186 : vector<1x128xf32> to vector<16x128xf32>
    %188 = arith.addf %185, %187 : vector<16x128xf32>
    %189 = vector.shape_cast %188 : vector<16x128xf32> to vector<2x8x128xf32>
    %190 = arith.addf %145, %189 : vector<2x8x128xf32>
    %c0_57 = arith.constant 0 : index
    %c0_58 = arith.constant 0 : index
    %c0_59 = arith.constant 0 : index
    %191 = vector.load %arg9[%c0_57, %c0_58, %c0_59] : memref<2x8x128xf32, #tpu.memory_space<vmem>>, vector<2x8x128xf32>
    tpu.vector_store %arg9[%c0_57, %c0_58, %c0_59], %190 {strides = array<i32>} : memref<2x8x128xf32, #tpu.memory_space<vmem>>, vector<2x8x128xf32>,
    %c1_i32 = arith.constant 1 : i32
    %192 = arith.cmpi eq, %arg0, %c1_i32 : i32
    %193 = arith.extui %192 : i1 to i32
    %c0_i32_60 = arith.constant 0 : i32
    %194 = arith.cmpi ne, %193, %c0_i32_60 : i32
    scf.if %194 {
      %195 = vector.extract_strided_slice %6 {offsets = [9, 0], sizes = [1, 128], strides = [1, 1]} : vector<11x128xf32> to vector<1x128xf32>
      %196 = vector.extract_strided_slice %6 {offsets = [10, 0], sizes = [1, 128], strides = [1, 1]} : vector<11x128xf32> to vector<1x128xf32>
      %cst_61 = arith.constant dense<0.000000e+00> : vector<2x8xf32>
      %197 = vector.multi_reduction <add>, %190, %cst_61 [2] : vector<2x8x128xf32> to vector<2x8xf32>
      %198 = vector.shape_cast %197 : vector<2x8xf32> to vector<2x8x1xf32>
      %cst_62 = arith.constant 1.280000e+02 : f32
      %199 = vector.broadcast %cst_62 : f32 to vector<2x8x1xf32>
      %200 = arith.divf %198, %199 : vector<2x8x1xf32>
      %201 = vector.broadcast %200 : vector<2x8x1xf32> to vector<2x8x128xf32>
      %202 = arith.subf %190, %201 : vector<2x8x128xf32>
      %203 = arith.mulf %202, %202 : vector<2x8x128xf32>
      %cst_63 = arith.constant dense<0.000000e+00> : vector<2x8xf32>
      %204 = vector.multi_reduction <add>, %203, %cst_63 [2] : vector<2x8x128xf32> to vector<2x8xf32>
      %205 = vector.shape_cast %204 : vector<2x8xf32> to vector<2x8x1xf32>
      %cst_64 = arith.constant 0.00787401571 : f32
      %206 = vector.broadcast %cst_64 : f32 to vector<2x8x1xf32>
      %207 = arith.mulf %205, %206 : vector<2x8x1xf32>
      %208 = math.sqrt %207 : vector<2x8x1xf32>
      %cst_65 = arith.constant 9.99999997E-7 : f32
      %209 = vector.broadcast %cst_65 : f32 to vector<2x8x1xf32>
      %210 = arith.addf %208, %209 : vector<2x8x1xf32>
      %211 = tpu.reciprocal %210 {approx = true} : vector<2x8x1xf32> -> vector<2x8x1xf32>
      %212 = vector.broadcast %211 : vector<2x8x1xf32> to vector<2x8x128xf32>
      %213 = arith.mulf %202, %212 : vector<2x8x128xf32>
      %214 = vector.shape_cast %195 : vector<1x128xf32> to vector<1x1x128xf32>
      %215 = vector.broadcast %214 : vector<1x1x128xf32> to vector<2x8x128xf32>
      %216 = arith.mulf %215, %213 : vector<2x8x128xf32>
      %217 = vector.shape_cast %196 : vector<1x128xf32> to vector<1x1x128xf32>
      %218 = vector.broadcast %217 : vector<1x1x128xf32> to vector<2x8x128xf32>
      %219 = arith.addf %216, %218 : vector<2x8x128xf32>
      %220 = arith.truncf %219 : vector<2x8x128xf32> to vector<2x8x128xbf16>
      %c0_66 = arith.constant 0 : index
      %c0_67 = arith.constant 0 : index
      %c0_68 = arith.constant 0 : index
      %221 = vector.load %arg8[%c0_66, %c0_67, %c0_68] : memref<2x8x128xbf16, #tpu.memory_space<vmem>>, vector<2x8x128xbf16>
      tpu.vector_store %arg8[%c0_66, %c0_67, %c0_68], %220 {strides = array<i32>} : memref<2x8x128xbf16, #tpu.memory_space<vmem>>, vector<2x8x128xbf16>,
    } else {
    }
    return
  }
  func.func @transform_0(%arg0: i32) -> (i32, i32, i32) {
    %c0_i32 = arith.constant 0 : i32
    %c0_i32_0 = arith.constant 0 : i32
    %c0_i32_1 = arith.constant 0 : i32
    %c0_i32_2 = arith.constant 0 : i32
    return %c0_i32, %c0_i32_0, %c0_i32_1 : i32, i32, i32
  }
  func.func @transform_1(%arg0: i32) -> (i32, i32, i32) {
    %c0_i32 = arith.constant 0 : i32
    %c0_i32_0 = arith.constant 0 : i32
    %c0_i32_1 = arith.constant 0 : i32
    %c0_i32_2 = arith.constant 0 : i32
    return %c0_i32, %c0_i32_0, %c0_i32_1 : i32, i32, i32
  }
  func.func @transform_2(%arg0: i32) -> (i32, i32, i32) {
    %c0_i32 = arith.constant 0 : i32
    %c0_i32_0 = arith.constant 0 : i32
    %c0_i32_1 = arith.constant 0 : i32
    return %arg0, %c0_i32, %c0_i32_0 : i32, i32, i32
  }
  func.func @transform_3(%arg0: i32) -> (i32, i32, i32) {
    %c0_i32 = arith.constant 0 : i32
    %c0_i32_0 = arith.constant 0 : i32
    %c0_i32_1 = arith.constant 0 : i32
    return %arg0, %c0_i32, %c0_i32_0 : i32, i32, i32
  }
  func.func @transform_4(%arg0: i32) -> (i32, i32, i32) {
    %c0_i32 = arith.constant 0 : i32
    %c0_i32_0 = arith.constant 0 : i32
    %c0_i32_1 = arith.constant 0 : i32
    return %arg0, %c0_i32, %c0_i32_0 : i32, i32, i32
  }
  func.func @transform_5(%arg0: i32) -> (i32, i32, i32) {
    %c0_i32 = arith.constant 0 : i32
    %c0_i32_0 = arith.constant 0 : i32
    %c0_i32_1 = arith.constant 0 : i32
    return %arg0, %c0_i32, %c0_i32_0 : i32, i32, i32
  }
  func.func @transform_6(%arg0: i32) -> (i32, i32, i32) {
    %c0_i32 = arith.constant 0 : i32
    %c0_i32_0 = arith.constant 0 : i32
    %c0_i32_1 = arith.constant 0 : i32
    return %arg0, %c0_i32, %c0_i32_0 : i32, i32, i32
  }
  func.func @transform_7(%arg0: i32) -> (i32, i32, i32) {
    %c0_i32 = arith.constant 0 : i32
    %c0_i32_0 = arith.constant 0 : i32
    %c0_i32_1 = arith.constant 0 : i32
    %c0_i32_2 = arith.constant 0 : i32
    return %c0_i32, %c0_i32_0, %c0_i32_1 : i32, i32, i32
  }
}

</mosaic_0001>

<bundles_post_ra>
// kernel: tpu_custom_call.1
= control target key start
LH: loop header
LB: loop body
LE: loop exit
PB: predicated region body
PF: predicated region fallthrough
CT: control target
= control target key end

     0   :  { %s3690_s0 = inlined_call_operand.vmem [shape: f32[2,8,128], index: 0, kind: input, shape index: {}]   ;;  %s3691_s1 = inlined_call_operand.vmem [shape: f32[2,1,8], index: 1, kind: input, shape index: {}]   ;;  %s3692_s2 = inlined_call_operand.vmem [shape: f32[2,11,128], index: 2, kind: input, shape index: {}]   ;;  %s3693_s3 = inlined_call_operand.hbm [shape: bf16[2,128,512], index: 3, kind: input, shape index: {}]   ;;  %s3694_s4 = inlined_call_operand.hbm [shape: bf16[2,128,256], index: 4, kind: input, shape index: {}]   ;;  %s3695_s5 = inlined_call_operand.vmem [shape: f32[2,1,256], index: 5, kind: input, shape index: {}]   ;;  %s3696_s6 = inlined_call_operand.hbm [shape: bf16[2,256,128], index: 6, kind: input, shape index: {}]   ;;  %s3697_s7 = inlined_call_operand.hbm [shape: bf16[2,8,128], index: 7, kind: output, shape index: {}]  }
   0x1   :  { %3699 = sst [smem:[#allocation14_spill]] %s3694_s4 }
   0x2   :  { %12 = vsyncpa [#allocation4], 0 }
   0x3   :  { %14 = vsyncpa [#allocation4 + $0x1], 0 }
   0x4   :  { %15 = vsyncpa [#allocation7], 0 }
   0x5   :  { %17 = vsyncpa [#allocation7 + $0x1], 0 }
   0x6   :  { %18 = vsyncpa [#allocation5], 0  ;;  %s3120_s24 = smov 0   ;;  %s3122_s25 = smov 0  }
   0x7   :  { %s3124_s26 = smov 0   ;;  %s3126_s27 = smov 0  }
   0x8 LB: > { %s3139_s28 = sadd.s32 4294967295, %s3061_s27   ;;  %s3142_s29 = sadd.s32 1, %s3061_s27   ;;  %s3061_s27 = sphi %s3126_s27, %s3712_s27   ;;  %s3057_s26 = sphi %s3124_s26, %s3711_s26   ;;  %s3053_s25 = sphi %s3122_s25, %s3710_s25   ;;  %s3049_s24 = sphi %s3120_s24, %s3709_s24  }
   0x9   : > { %s96_s30 = ssub.s32 %s3061_s27, %s3142_s29  ;;  %s99_s8 = sadd.s32 1, %s3057_s26 }
   0xa   : > { %p97_p0 = scmp.eq.s32.totalorder %s96_s30, 0  ;;  %p106_p1 = scmp.ne.s32.totalorder %s3057_s26, %s3053_s25 }
   0xb   : > { %p107_p2 = scmp.eq.s32.totalorder %s3061_s27, 0  ;;  %p112_p3 = scmp.ne.s32.totalorder %s3053_s25, %s3049_s24 }
   0xc   : > { %s3152_s9 = scalar_select %p97_p0, %s3057_s26, %s99_s8  }
   0xd   : > { %p108_p4 = por %p107_p2, %p106_p1  ;;  %p113_p5 = scmp.eq.s32.totalorder %s3139_s28, 0 }
   0xe   : > { %3700 = sst [smem:[#allocation13_spill]] %s3152_s9  ;;  %p2708_p6 = scmp.lt.s32.totalorder %s3061_s27, 2 }
   0xf   : > { %p3156_p7 = por %p113_p5, %p112_p3  ;;  %s3161_s11 = sand.u32 1, %s3057_s26  }
  0x10   : > { %p3163_p8 = pnand %p2708_p6, %p108_p4  ;;  %s270_s13 = sand.u32 1, %s3061_s27  }
  0x11   : > { %s3701_s10 = scalar_select %p3156_p7, 1, 0 }
  0x12   : > { %s2358_s14 = sshll.u32 %s3161_s11, 7  ;;  %s2466_s15 = sshll.u32 %s3061_s27, 11 }
  0x13   : > { %s274_s16 = scalar_lea.vmem [#allocation6], %s2358_s14  ;;  %s3703_s4 = sld [smem:[#allocation14_spill]] }
  0x14   : > { %s281_s17 = sshll.u32 %s274_s16, 4  ;;  %s3181_s21 = scalar_lea.sflag [#allocation7], %s270_s13  ;;  %s3179_s17 = int_to_ptr.vmem [resolvable:$true] %s281_s17 }
  0x15   : > { %p3187_p10 = pneg %p3163_p8 }
  0x19   : > { %s3177_s20 = scalar_lea.hbm %s3703_s4, %s2466_s15  ;;  %s2916_s8 = scalar_lea.hbm %s3703_s4, 4096 }
  0x1a   : > { %s2911_s22 = scalar_lea.hbm %s3177_s20, 2048  ;;  %p2917_p13 = scmp.lt.s32.totalorder %s3177_s20, %s3703_s4 }
  0x1b   : > { %p2912_p9 = scmp.ne.s32.totalorder %s3177_s20, %s2911_s22  ;;  %p2918_p0 = scmp.lt.s32.totalorder %s2916_s8, %s2911_s22 }
  0x1d   : > { %p2914_p11 = pnand %p3187_p10, %p2912_p9  ;;  %p2919_p1 = por %p2918_p0, %p2917_p13 }
  0x1f   : > { %p2915_p12 = pneg %p2914_p11 }
  0x21   : > { %p2920_p2 = pnand %p2919_p1, %p2915_p12 }
  0x23   : > { %2923 = shalt.err (!%p2920_p2)
}
  0x24   : > { %s2924_s13 = scalar_lea.vmem %s3179_s17, 2048  ;;  %s3063_s19 = smov [#allocation6]  }
  0x25   : > { %p2925_p3 = scmp.ne.s32.totalorder %s3179_s17, %s2924_s13  ;;  %s2929_s24 = sshll.u32 %s3063_s19, 4  ;;  %s2930_s24 = int_to_ptr.vmem [resolvable:$false] %s2929_s24 }
  0x26   : > { %s2931_s30 = scalar_lea.vmem %s2930_s24, 4096  ;;  %p2932_p6 = scmp.lt.s32.totalorder %s3179_s17, %s2930_s24 }
  0x27   : > { %p2927_p4 = pnand %p2925_p3, %p3187_p10  ;;  %p2933_p9 = scmp.lt.s32.totalorder %s2931_s30, %s2924_s13 }
  0x29   : > { %p2928_p5 = pneg %p2927_p4  ;;  %p2934_p11 = por %p2933_p9, %p2932_p6 }
  0x2b   : > { %p2935_p7 = pnand %p2934_p11, %p2928_p5 }
  0x2d   : > { %2938 = shalt.err (!%p2935_p7)
}
  0x2e   : > { %s3064_s22 = smov 128   ;;  %s3065_s8 = smov 8  }
  0x2f   : > { %2704 = dma.hbm_to_vmem [thread:$0]  (!%p3163_p8), %s3177_s20, 2048, %s3179_s17, %s3181_s21, %s3064_s22, %s3064_s22, %s3065_s8  }
  0x30   : > { %s3215_s13 = scalar_lea.hbm %s3696_s6, %s2466_s15  ;;  %s302_s19 = scalar_lea.vmem [#allocation8], %s2358_s14 }
  0x31   : > { %s309_s24 = sshll.u32 %s302_s19, 4  ;;  %p2364_p7 = scmp.ge.s32.totalorder %s3061_s27, 1  ;;  %s3220_s24 = int_to_ptr.vmem [resolvable:$true] %s309_s24 }
  0x32   : > { %p317_p12 = scmp.lt.s32.totalorder %s3061_s27, 3  ;;  %s2355_s30 = sshll.u32 %s3161_s11, 8 }
  0x33   : > { %s2465_s17 = sshll.u32 %s3061_s27, 12  ;;  %s253_s20 = scalar_lea.vmem [#allocation3], %s2355_s30 }
  0x34   : > { %p3224_p13 = pnand %p2364_p7, %p317_p12  ;;  %s260_s22 = sshll.u32 %s253_s20, 4  ;;  %s3234_s22 = int_to_ptr.vmem [resolvable:$true] %s260_s22 }
  0x35   : > { %s3232_s15 = scalar_lea.hbm %s3693_s3, %s2465_s17  ;;  %s250_s14 = scalar_lea.sflag [#allocation4], %s3161_s11 }
  0x36   : > { %s3705_s4 = scalar_select %p3224_p13, 1, 0 }
  0x37   : > { %s2939_s18 = scalar_lea.hbm %s3232_s15, 4096  ;;  %s2944_s30 = scalar_lea.hbm %s3693_s3, 8192 }
  0x38   : > { %p2940_p0 = scmp.ne.s32.totalorder %s3232_s15, %s2939_s18  ;;  %p2945_p3 = scmp.lt.s32.totalorder %s3232_s15, %s3693_s3 }
  0x39   : > { %p2946_p4 = scmp.lt.s32.totalorder %s2944_s30, %s2939_s18 }
  0x3a   : > { %p2942_p1 = pnand %p2940_p0, %p3187_p10 }
  0x3b   : > { %p2947_p5 = por %p2946_p4, %p2945_p3 }
  0x3c   : > { %p2943_p2 = pneg %p2942_p1 }
  0x3e   : > { %p2948_p6 = pnand %p2947_p5, %p2943_p2 }
  0x40   : > { %2951 = shalt.err (!%p2948_p6)
}
  0x41   : > { %s2952_s17 = scalar_lea.vmem %s3234_s22, 4096  ;;  %s3066_s8 = smov [#allocation3]  }
  0x42   : > { %p2953_p9 = scmp.ne.s32.totalorder %s3234_s22, %s2952_s17  ;;  %s2957_s16 = sshll.u32 %s3066_s8, 4  ;;  %s2958_s16 = int_to_ptr.vmem [resolvable:$false] %s2957_s16 }
  0x43   : > { %s2959_s19 = scalar_lea.vmem %s2958_s16, 8192  ;;  %p2960_p12 = scmp.lt.s32.totalorder %s3234_s22, %s2958_s16 }
  0x44   : > { %p2955_p11 = pnand %p2953_p9, %p3187_p10  ;;  %p2961_p0 = scmp.lt.s32.totalorder %s2959_s19, %s2952_s17 }
  0x46   : > { %p2956_p7 = pneg %p2955_p11  ;;  %p2962_p1 = por %p2961_p0, %p2960_p12 }
  0x48   : > { %p2963_p13 = pnand %p2962_p1, %p2956_p7 }
  0x4a   : > { %2966 = shalt.err (!%p2963_p13)
}
  0x4b   : > { %s3067_s9 = smov 256   ;;  %s3068_s18 = smov 16  }
  0x4c   : > { %2701 = dma.hbm_to_vmem [thread:$0]  (!%p3163_p8), %s3232_s15, 4096, %s3234_s22, %s250_s14, %s3067_s9, %s3067_s9, %s3068_s18  }
  0x4d   : > { %s2967_s27 = scalar_lea.hbm %s3215_s13, 2048  ;;  %s2972_s17 = scalar_lea.hbm %s3696_s6, 4096 }
  0x4e   : > { %p2968_p2 = scmp.ne.s32.totalorder %s3215_s13, %s2967_s27  ;;  %p2973_p13 = scmp.lt.s32.totalorder %s3215_s13, %s3696_s6 }
  0x4f   : > { %p2974_p5 = scmp.lt.s32.totalorder %s2972_s17, %s2967_s27 }
  0x50   : > { %p2970_p3 = pnand %p2968_p2, %p3187_p10 }
  0x51   : > { %p2975_p6 = por %p2974_p5, %p2973_p13 }
  0x52   : > { %p2971_p4 = pneg %p2970_p3 }
  0x54   : > { %p2976_p9 = pnand %p2975_p6, %p2971_p4 }
  0x56   : > { %2979 = shalt.err (!%p2976_p9)
}
  0x57   : > { %s2980_s11 = scalar_lea.vmem %s3220_s24, 2048  ;;  %s3069_s22 = smov [#allocation8]  }
  0x58   : > { %p2981_p11 = scmp.ne.s32.totalorder %s3220_s24, %s2980_s11  ;;  %s2985_s15 = sshll.u32 %s3069_s22, 4  ;;  %s2986_s15 = int_to_ptr.vmem [resolvable:$false] %s2985_s15 }
  0x59   : > { %s2987_s14 = scalar_lea.vmem %s2986_s15, 4096  ;;  %p2988_p0 = scmp.lt.s32.totalorder %s3220_s24, %s2986_s15 }
  0x5a   : > { %p2983_p7 = pnand %p2981_p11, %p3187_p10  ;;  %p2989_p1 = scmp.lt.s32.totalorder %s2987_s14, %s2980_s11 }
  0x5c   : > { %p2984_p12 = pneg %p2983_p7  ;;  %p2990_p2 = por %p2989_p1, %p2988_p0 }
  0x5e   : > { %p2991_p3 = pnand %p2990_p2, %p2984_p12 }
  0x60   : > { %2994 = shalt.err (!%p2991_p3)
}
  0x61   : > { %s3070_s19 = smov 64   ;;  %s3071_s9 = smov 4  }
  0x62   : > { %2707 = dma.hbm_to_vmem [thread:$0]  (!%p3163_p8), %s3215_s13, 2048, %s3220_s24, %s3181_s21, %s3070_s19, %s3070_s19, %s3071_s9  }
  0x63   : > { %p3706_p10 = scmp.ne.s32.totalorder %s3705_s4, 0 }
  0x64   : > { %s323_s23 = sand.u32 (!%p3706_p10), 1, %s3053_s25   ;;  %p3707_p4 = scmp.ne.s32.totalorder (!%p3706_p10), %s3701_s10, 0 }
  0x65   : > { %321 = sbr.rel (%p3706_p10) target bundleno = 4341 (0x10f5), region = 48  ;;  %s2365_s18 = sshll.u32 (!%p3706_p10), %s323_s23, 8 }
  0x66   : > { %s324_s27 = scalar_lea.sflag (!%p3706_p10), [#allocation4], %s323_s23  ;;  %s3283_s30 = scalar_lea.vmem (!%p3706_p10), [#allocation3], %s2365_s18 }
  0x6a   : > { %3036 = dma.done.wait (%p3707_p4), %s324_s27, 4096  }
  0x6b   : > { %3038 = vsyncadd (%p3707_p4), %s324_s27, 4294963200  ;;  %s332_s20 = sand.u32 1, %s3139_s28   ;;  %s2366_s12 = sshll.u32 %s323_s23, 7 }
  0x6c   : > { %s333_s21 = scalar_lea.sflag [#allocation7], %s332_s20  ;;  %s3290_s13 = scalar_lea.vmem [#allocation6], %s2366_s12 }
  0x6d   : > { %3040 = dma.done.wait (%p3707_p4), %s333_s21, 4096  }
  0x6e   : > { %3042 = vsyncadd (%p3707_p4), %s333_s21, 4294963200  ;;  %p390_p8 = scmp.lt.s32.totalorder %s3139_s28, 1  ;;  %s3308_s19 = scalar_lea.vmem [#allocation8], %s2366_s12 }
  0x6f   : > { %p2371_p13 = scmp.ne.s32.totalorder %s3139_s28, 0 }
  0x70   : > { %s391_s4 = scalar_select %p390_p8, %s3139_s28, 1 }
  0x71   : > { %403 = sbr.rel (%p2371_p13) target bundleno = 120 (0x78), region = 64 }
  0x72   : > { %s2468_s24 = sshll.u32 %s391_s4, 4  ;;  %s2370_s17 = sshll.u32 %s391_s4, 1 }
  0x73   : > { %s3301_s11 = scalar_lea.vmem %s3692_s2, %s2468_s24  ;;  %s3306_s14 = scalar_lea.vmem %s3695_s5, %s2370_s17 }
  0x76   : > { %v404_v0 = vld [vmem:[%s3690_s0] sm:$0xff]  ;;  %v405_v1 = vld [vmem:[%s3690_s0 + $0x8] sm:$0xff] }
  0x77   : > { %406 = vst [vmem:[#allocation2] sm:$0xff] %v404_v0  ;;  %407 = vst [vmem:[#allocation2 + $0x8] sm:$0xff] %v405_v1 }
  0x78 PF: > { %v2772_v12 = vld [vmem:[%s3283_s30 + $0xe4] ss:$16 sps:$4 sm:$0xff]   ;;  %v2774_v13 = vld [vmem:[%s3283_s30 + $0xe0] ss:$16 sps:$4 sm:$0xff]   ;;  %v2775_v14 = vld [vmem:[%s3283_s30 + $0xe8] ss:$16 sps:$4 sm:$0xff]   ;;  %v451_v54 = vlaneseq }
  0x79   : > { %640 = vmatprep.subr.bf16.mxu0 %v2772_v12  ;;  %v3072_v15 = vmov 0.0   ;;  %v2776_v16 = vld [vmem:[%s3283_s30 + $0xc4] ss:$16 sps:$4 sm:$0xff]   ;;  %v2778_v17 = vld [vmem:[%s3283_s30 + $0xc0] ss:$16 sps:$4 sm:$0xff]   ;;  %v3073_v29 = vmov 0  }
  0x7a   : > { %2552 = vmatprep.subr.bf16.mxu1 %v3072_v15  ;;  %641 = vmatpush1.bf16.msra.mxu0 %v2774_v13  ;;  %v2779_v18 = vld [vmem:[%s3283_s30 + $0xc8] ss:$16 sps:$4 sm:$0xff]   ;;  %v2780_v19 = vld [vmem:[%s3283_s30 + $0xa4] ss:$16 sps:$4 sm:$0xff]   ;;  %v2782_v20 = vld [vmem:[%s3283_s30 + $0xa0] ss:$16 sps:$4 sm:$0xff]  }
  0x7b   : > { %2553 = vmatpush3.bf16.msra.mxu1 %v2775_v14  ;;  %642 = vmatprep.subr.bf16.mxu0 %v2776_v16  ;;  %v2783_v21 = vld [vmem:[%s3283_s30 + $0xa8] ss:$16 sps:$4 sm:$0xff]   ;;  %v2784_v22 = vld [vmem:[%s3283_s30 + $0x84] ss:$16 sps:$4 sm:$0xff]   ;;  %v2786_v23 = vld [vmem:[%s3283_s30 + $0x80] ss:$16 sps:$4 sm:$0xff]  }
  0x7c   : > { %2554 = vmatprep.subr.bf16.mxu1 %v3072_v15  ;;  %v2787_v24 = vld [vmem:[%s3283_s30 + $0x88] ss:$16 sps:$4 sm:$0xff]   ;;  %v2788_v25 = vld [vmem:[%s3283_s30 + $0x64] ss:$16 sps:$4 sm:$0xff]   ;;  %v2790_v26 = vld [vmem:[%s3283_s30 + $0x60] ss:$16 sps:$4 sm:$0xff]   ;;  %672 = vmatprep.mubr.bf16.mxu0 %v3073_v29 }
  0x7d   : > { %v2791_v27 = vld [vmem:[%s3283_s30 + $0x68] ss:$16 sps:$4 sm:$0xff]   ;;  %v2792_v28 = vld [vmem:[%s3283_s30 + $0x44] ss:$16 sps:$4 sm:$0xff]   ;;  %vm3074_vm0 = vmmov 0   ;;  %v3362_v55 = vshrl.u32 %v451_v54, 7 }
  0x7e   : > { %v408_v2 = vld [vmem:[#allocation2] sm:$0xff]  ;;  %v409_v3 = vld [vmem:[#allocation2 + $0x8] sm:$0xff]  ;;  %643 = vmatpush1.bf16.msra.mxu0 %v2778_v17  ;;  %2568 = vmatprep.mubr.msk.bf16.mxu1 %vm3074_vm0, %v3072_v15  ;;  %vm760_vm5 = vcmask 261120   ;;  %vm897_vm6 = vcmask 1043456   ;;  %vm869_vm7 = vcmask 64512   ;;  %s3075_s4 = smov 96  }
  0x7f   : > { %414 = vadd.xlane.f32.xlu0 %v408_v2  ;;  %2555 = vmatpush3.bf16.msra.mxu1 %v2779_v18  ;;  %v2794_v30 = vld [vmem:[%s3283_s30 + $0x40] ss:$16 sps:$4 sm:$0xff]   ;;  %v2795_v31 = vld [vmem:[%s3283_s30 + $0x48] ss:$16 sps:$4 sm:$0xff]   ;;  %v2796_v32 = vld [vmem:[%s3283_s30 + $0x24] ss:$16 sps:$4 sm:$0xff]  }
  0x80   : > { %2556 = vmatprep.subr.bf16.mxu1 %v3072_v15  ;;  %644 = vmatprep.subr.bf16.mxu0 %v2780_v19  ;;  %v2798_v33 = vld [vmem:[%s3283_s30 + $0x20] ss:$16 sps:$4 sm:$0xff]   ;;  %v2799_v34 = vld [vmem:[%s3283_s30 + $0x28] ss:$16 sps:$4 sm:$0xff]   ;;  %v2800_v35 = vld [vmem:[%s3283_s30 + $0x4] ss:$16 sps:$4 sm:$0xff]  }
  0x81   : > { %v2802_v36 = vld [vmem:[%s3283_s30] ss:$16 sps:$4 sm:$0xff]   ;;  %v2803_v37 = vld [vmem:[%s3283_s30 + $0x8] ss:$16 sps:$4 sm:$0xff]   ;;  %v3365_v56 = vsub.s32 0, %v3362_v55  ;;  %v459_v61 = vsub.s32 2, %v3362_v55 }
  0x82   : > { %645 = vmatpush1.bf16.msra.mxu0 %v2782_v20  ;;  %v3368_v57 = vld [vmem:[%s3301_s11] sm:$0xff]  ;;  %s3076_s24 = smov 64   ;;  %s3077_s17 = smov 32   ;;  %vm1685_vm8 = vcmask 523264   ;;  %vm1688_vm9 = vcmask 785408  }
  0x83   : > { %416 = vadd.xlane.f32.xlu0 %v409_v3  ;;  %2557 = vmatpush3.bf16.msra.mxu1 %v2783_v21  ;;  %v454_v60 = vrot.slane %v3368_v57, %v3365_v56  ;;  %v460_v1 = vrot.slane %v3368_v57, %v459_v61  ;;  %p2460_p5 = scmp.ne.s32.totalorder %s3139_s28, 1 }
  0x84   : > { %2558 = vmatprep.subr.bf16.mxu1 %v3072_v15  ;;  %646 = vmatprep.subr.bf16.mxu0 %v2784_v22 }
  0x86   : > { %647 = vmatpush1.bf16.msra.mxu0 %v2786_v23 }
  0x87   : > { %2559 = vmatpush3.bf16.msra.mxu1 %v2787_v24  ;;  %648 = vmatprep.subr.bf16.mxu0 %v2788_v25 }
  0x88   : > { %2560 = vmatprep.subr.bf16.mxu1 %v3072_v15 }
  0x8a   : > { %649 = vmatpush1.bf16.msra.mxu0 %v2790_v26 }
  0x8b   : > { %2561 = vmatpush3.bf16.msra.mxu1 %v2791_v27  ;;  %650 = vmatprep.subr.bf16.mxu0 %v2792_v28 }
  0x8c   : > { %2562 = vmatprep.subr.bf16.mxu1 %v3072_v15 }
  0x8e   : > { %651 = vmatpush1.bf16.msra.mxu0 %v2794_v30 }
  0x8f   : > { %2563 = vmatpush3.bf16.msra.mxu1 %v2795_v31  ;;  %652 = vmatprep.subr.bf16.mxu0 %v2796_v32 }
  0x90   : > { %2564 = vmatprep.subr.bf16.mxu1 %v3072_v15 }
  0x92   : > { %653 = vmatpush1.bf16.msra.mxu0 %v2798_v33 }
  0x93   : > { %2565 = vmatpush3.bf16.msra.mxu1 %v2799_v34  ;;  %654 = vmatprep.subr.bf16.mxu0 %v2800_v35 }
  0x94   : > { %2566 = vmatprep.subr.bf16.mxu1 %v3072_v15 }
  0x96   : > { %655 = vmatpush1.bf16.msra.mxu0 %v2802_v36 }
  0x97   : > { %2567 = vmatpush3.bf16.msra.mxu1 %v2803_v37  ;;  %2596 = vmatprep.subr.bf16.mxu0 %v3072_v15  ;;  %v3420_v37 = vld [vmem:[%s3691_s1] ss:$0 sm:$0xff] }
  0x98   : > { %2572 = vmatprep.subr.bf16.mxu1 %v3072_v15 }
 0x108   : > { %v415_v4 = vpop.xlane.xlu0 %414 }
 0x109   : > { %v419_v5 = vmul.f32 0.0078125, %v415_v4 }
 0x10b   : > { %v3317_v6 = vsub.f32 %v408_v2, %v419_v5 }
 0x10c   : > { %v417_v7 = vpop.xlane.xlu0 %416 }
 0x10d   : > { %v420_v8 = vmul.f32 0.0078125, %v417_v7  ;;  %v423_v9 = vmul.f32 %v3317_v6, %v3317_v6  ;;  %v750_v7 = vsub.s32 6, %v3362_v55 }
 0x10f   : > { %v3321_v10 = vsub.f32 %v409_v3, %v420_v8  ;;  %425 = vadd.xlane.f32.xlu1 %v423_v9  ;;  %v751_v14 = vrot.slane %v3368_v57, %v750_v7 }
 0x111   : > { %v424_v11 = vmul.f32 %v3321_v10, %v3321_v10 }
 0x113   : > { %427 = vadd.xlane.f32.xlu1 %v424_v11  ;;  %v726_v11 = vsub.s32 4, %v3362_v55 }
 0x115   : > { %v727_v19 = vrot.slane %v3368_v57, %v726_v11 }
 0x198   : > { %v426_v38 = vpop.xlane.xlu1 %425 }
 0x199   : > { %v429_v39 = vmul.f32 0.007874016, %v426_v38 }
 0x19b   : > { %2852 = vrsqrt.f32 %v429_v39  ;;  %vm433_vm1 = vcmp.eq.f32.partialorder %v429_v39, inf  ;;  %v436_v44 = vand.u32 2147483648, %v429_v39  ;;  %vm435_vm2 = vcmp.eq.f32.partialorder %v429_v39, 0.0 }
 0x19c   : > { %v428_v40 = vpop.xlane.xlu1 %427 }
 0x19d   : > { %v430_v41 = vmul.f32 0.007874016, %v428_v40 }
 0x19f   : > { %2854 = vrsqrt.f32 %v430_v41  ;;  %vm440_vm3 = vcmp.eq.f32.partialorder %v430_v41, inf  ;;  %v443_v50 = vand.u32 2147483648, %v430_v41  ;;  %vm442_vm4 = vcmp.eq.f32.partialorder %v430_v41, 0.0 }
 0x1a8   : > { %v2853_v42 = vpop.eup %2852 }
 0x1a9   : > { %v432_v43 = vmul.f32 %v2853_v42, %v429_v39 }
 0x1ab   : > { %v434_v45 = vsel %vm433_vm1, %v429_v39, %v432_v43 }
 0x1ac   : > { %v2855_v46 = vpop.eup %2854  ;;  %v437_v47 = vsel %vm435_vm2, %v436_v44, %v434_v45  ;;  %v3427_v45 = vld [vmem:[%s3691_s1 + $0x1] ss:$0 sm:$0xff] }
 0x1ad   : > { %v445_v48 = vadd.f32 1e-06, %v437_v47  ;;  %v439_v49 = vmul.f32 %v2855_v46, %v430_v41 }
 0x1af   : > { %2856 = vrcp.f32 %v445_v48  ;;  %v441_v51 = vsel %vm440_vm3, %v430_v41, %v439_v49 }
 0x1b0   : > { %v444_v52 = vsel %vm442_vm4, %v443_v50, %v441_v51 }
 0x1b1   : > { %v446_v53 = vadd.f32 1e-06, %v444_v52 }
 0x1b3   : > { %2858 = vrcp.f32 %v446_v53 }
 0x1bc   : > { %v2857_v58 = vpop.eup %2856 }
 0x1bd   : > { %v449_v59 = vmul.f32 %v2857_v58, %v3317_v6  ;;  %v738_v6 = vsub.s32 5, %v3362_v55 }
 0x1bf   : > { %v455_v0 = vmul.f32 %v454_v60, %v449_v59  ;;  %v739_v8 = vrot.slane %v3368_v57, %v738_v6 }
 0x1c0   : > { %v2859_v62 = vpop.eup %2858 }
 0x1c1   : > { %v450_v63 = vmul.f32 %v2859_v62, %v3321_v10  ;;  %v461_v3 = vadd.f32 %v460_v1, %v455_v0 }
 0x1c3   : > { %v456_v2 = vmul.f32 %v454_v60, %v450_v63 }
 0x1c5   : > { %v462_v4 = vadd.f32 %v460_v1, %v456_v2 }
 0x1c7   : > { %v511_v5 = vpack.c.bf16 %v462_v4, %v461_v3 }
 0x1c9   : > { %673 = vmatmul.mubr.bf16.vlgmr.msra.gmra.mxu0 %v511_v5  ;;  %2569 = vmatmul.mubr.bf16.vlgmr.msra.gmra.mxu1 %v511_v5 }
 0x1ca   : > { %2574 = vmatprep.mubr.msk.bf16.mxu1 %vm3074_vm0, %v3072_v15  ;;  %2598 = vmatprep.mubr.msk.bf16.mxu0 %vm3074_vm0, %v3072_v15 }
 0x289   : > { %v674_v9 = vpop.f32.mrf.mxu0  ;;  %v717_v10 = vpop.f32.mrf.mxu1 }
 0x28a   : > { %v728_v26 = vadd.f32 %v727_v19, %v674_v9  ;;  %v752_v30 = vadd.f32 %v751_v14, %v717_v10 }
 0x28b   : > { %v676_v12 = vpop.f32.mrf.mxu0  ;;  %v2570_v13 = vpop.f32.mrf.mxu1 }
 0x28c   : > { %v740_v16 = vadd.f32 %v739_v8, %v676_v12  ;;  %v3397_v28 = vpack.c.bf16 %v728_v26, %v728_v26  ;;  %v3406_v33 = vpack.c.bf16 %v752_v30, %v752_v30 }
 0x28d   : > { %v678_v17 = vpop.f32.mrf.mxu0  ;;  %v720_v18 = vpop.f32.mrf.mxu1 }
 0x28e   : > { %v3388_v20 = vpack.c.bf16 %v740_v16, %v740_v16  ;;  %v3390_v21 = vadd.f32 %v751_v14, %v720_v18  ;;  %v729_v32 = vadd.f32 %v727_v19, %v678_v17  ;;  %v899_v35 = vsel %vm897_vm6, %v3406_v33, 0 }
 0x28f   : > { %v680_v22 = vpop.f32.mrf.mxu0  ;;  %v2571_v23 = vpop.f32.mrf.mxu1 }
 0x290   : > { %v741_v24 = vadd.f32 %v739_v8, %v680_v22  ;;  %v765_v25 = vsel %vm760_vm5, %v3388_v20, 0  ;;  %v3408_v34 = vpack.c.bf16 %v729_v32, %v729_v32  ;;  %v3448_v9 = vpack.c.bf16 %v3390_v21, %v3390_v21 }
 0x291   : > { %2573 = vmatpush3.bf16.xpose.msra.mxu1 %v765_v25 }
 0x292   : > { %2578 = vmatprep.subr.bf16.mxu1 %v3072_v15  ;;  %v3395_v27 = vpack.c.bf16 %v741_v24, %v741_v24  ;;  %v945_v12 = vsel %vm897_vm6, %v3448_v9, 0 }
 0x294   : > { %v811_v31 = vsel %vm760_vm5, %v3395_v27, 0 }
 0x298   : > { %2575 = vmatmul.mubr.msk.bf16.vlgmr.msra.gmra.mxu1 %vm760_vm5, %v3397_v28 }
 0x299   : > { %2579 = vmatpush3.bf16.xpose.msra.mxu1 %v811_v31  ;;  %2580 = vmatprep.mubr.msk.bf16.mxu1 %vm3074_vm0, %v3072_v15 }
 0x29a   : > { %2584 = vmatprep.subr.bf16.mxu1 %v3072_v15 }
 0x2a0   : > { %2581 = vmatmul.mubr.msk.bf16.vlgmr.msra.gmra.mxu1 %vm760_vm5, %v3408_v34 }
 0x2a1   : > { %2585 = vmatpush3.bf16.msra.mxu1 %v899_v35  ;;  %2586 = vmatprep.mubr.msk.bf16.mxu1 %vm3074_vm0, %v3072_v15 }
 0x2a2   : > { %2590 = vmatprep.subr.bf16.mxu1 %v3072_v15 }
 0x358   : > { %v801_v36 = vpop.f32.mrf.mxu1 }
 0x359   : > { %v853_v38 = vmul.f32 0.17677669, %v801_v36 }
 0x35a   : > { %v2576_v39 = vpop.f32.mrf.mxu1 }
 0x35b   : > { %v867_v40 = vadd.f32 %v3420_v37, %v853_v38 }
 0x35c   : > { %v804_v41 = vpop.f32.mrf.mxu1 }
 0x35d   : > { %v870_v42 = vsel %vm869_vm7, %v867_v40, -inf }
 0x35e   : > { %871 = vmax.xlane.f32.xlu0 %v870_v42  ;;  %v2577_v43 = vpop.f32.mrf.mxu1 }
 0x360   : > { %v847_v44 = vpop.f32.mrf.mxu1 }
 0x361   : > { %v854_v46 = vmul.f32 0.17677669, %v847_v44 }
 0x362   : > { %v2582_v47 = vpop.f32.mrf.mxu1 }
 0x363   : > { %v868_v48 = vadd.f32 %v3427_v45, %v854_v46 }
 0x364   : > { %v850_v49 = vpop.f32.mrf.mxu1 }
 0x365   : > { %v873_v50 = vsel %vm869_vm7, %v868_v48, -inf }
 0x366   : > { %874 = vmax.xlane.f32.xlu1 %v873_v50  ;;  %v2583_v51 = vpop.f32.mrf.mxu1 }
 0x377   : > { %1039 = vrot.lane.b32.xlu1 %v3395_v27, %s3075_s4 }
 0x3e7   : > { %v872_v52 = vpop.xlane.xlu0 %871 }
 0x3e8   : > { %v876_v53 = vsub.f32 %v867_v40, %v872_v52 }
 0x3ea   : > { %v878_v54 = vmul.f32 1.442695, %v876_v53 }
 0x3ec   : > { %2860 = vpow2.f32 %v878_v54 }
 0x3ef   : > { %v875_v58 = vpop.xlane.xlu1 %874 }
 0x3f0   : > { %v877_v59 = vsub.f32 %v868_v48, %v875_v58 }
 0x3f2   : > { %v880_v60 = vmul.f32 1.442695, %v877_v59 }
 0x3f3   : > { %v1040_v3 = vpop.permute.xlu1 %1039 }
 0x3f4   : > { %2862 = vpow2.f32 %v880_v60  ;;  %v1045_v17 = vsel %vm760_vm5, %v1040_v3, 0 }
 0x3f9   : > { %v2861_v62 = vpop.eup %2860 }
 0x3fa   : > { %v882_v63 = vsel %vm869_vm7, %v2861_v62, 0.0 }
 0x3fb   : > { %883 = vadd.xlane.f32.xlu0 %v882_v63 }
 0x401   : > { %v2863_v0 = vpop.eup %2862 }
 0x402   : > { %v885_v1 = vsel %vm869_vm7, %v2863_v0, 0.0 }
 0x403   : > { %886 = vadd.xlane.f32.xlu1 %v885_v1 }
 0x411   : > { %989 = vrot.lane.b32.xlu0 %v3388_v20, %s3075_s4 }
 0x414   : > { %987 = vrot.lane.b32.xlu1 %v3397_v28, %s3075_s4 }
 0x418   : > { %1037 = vrot.lane.b32.xlu1 %v3408_v34, %s3075_s4 }
 0x484   : > { %v884_v2 = vpop.xlane.xlu0 %883 }
 0x485   : > { %2864 = vrcp.f32 %v884_v2 }
 0x488   : > { %v990_v4 = vpop.permute.xlu0 %989 }
 0x489   : > { %v995_v5 = vsel %vm760_vm5, %v990_v4, 0 }
 0x48a   : > { %2597 = vmatpush3.bf16.xpose.msra.mxu0 %v995_v5 }
 0x48b   : > { %2608 = vmatprep.subr.bf16.mxu0 %v3072_v15 }
 0x48c   : > { %v887_v6 = vpop.xlane.xlu1 %886 }
 0x48d   : > { %2866 = vrcp.f32 %v887_v6 }
 0x490   : > { %v988_v7 = vpop.permute.xlu1 %987 }
 0x491   : > { %2599 = vmatmul.mubr.msk.bf16.vlgmr.msra.gmra.mxu0 %vm760_vm5, %v988_v7 }
 0x492   : > { %v2865_v8 = vpop.eup %2864  ;;  %2610 = vmatprep.mubr.msk.bf16.mxu0 %vm3074_vm0, %v3072_v15 }
 0x493   : > { %v890_v10 = vmul.f32 %v2865_v8, %v2861_v62 }
 0x494   : > { %v1038_v18 = vpop.permute.xlu1 %1037 }
 0x495   : > { %v892_v11 = vpack.c.bf16 %v890_v10, %v890_v10 }
 0x497   : > { %2587 = vmatmul.mubr.msk.bf16.vlgmr.msra.gmra.mxu1 %vm869_vm7, %v892_v11 }
 0x498   : > { %2591 = vmatpush3.bf16.msra.mxu1 %v945_v12  ;;  %2592 = vmatprep.mubr.msk.bf16.mxu1 %vm3074_vm0, %v3072_v15 }
 0x499   : > { %2602 = vmatprep.subr.bf16.mxu1 %v3072_v15 }
 0x49a   : > { %v2867_v13 = vpop.eup %2866 }
 0x49b   : > { %v891_v14 = vmul.f32 %v2867_v13, %v2863_v0 }
 0x49d   : > { %v893_v16 = vpack.c.bf16 %v891_v14, %v891_v14 }
 0x49f   : > { %2593 = vmatmul.mubr.msk.bf16.vlgmr.msra.gmra.mxu1 %vm869_vm7, %v893_v16 }
 0x4a0   : > { %2603 = vmatpush3.bf16.xpose.msra.mxu1 %v1045_v17  ;;  %2604 = vmatprep.mubr.msk.bf16.mxu1 %vm3074_vm0, %v3072_v15 }
 0x4a1   : > { %2614 = vmatprep.subr.bf16.mxu1 %v3072_v15 }
 0x4a7   : > { %2605 = vmatmul.mubr.msk.bf16.vlgmr.msra.gmra.mxu1 %vm760_vm5, %v1038_v18 }
 0x4a8   : > { %2616 = vmatprep.mubr.msk.bf16.mxu1 %vm3074_vm0, %v3072_v15 }
 0x551   : > { %v1031_v19 = vpop.f32.mrf.mxu0 }
 0x552   : > { %v1087_v21 = vmul.f32 0.17677669, %v1031_v19 }
 0x553   : > { %v2600_v22 = vpop.f32.mrf.mxu0 }
 0x554   : > { %v1089_v23 = vadd.f32 %v3420_v37, %v1087_v21 }
 0x555   : > { %v1034_v24 = vpop.f32.mrf.mxu0 }
 0x556   : > { %v1091_v25 = vsel %vm869_vm7, %v1089_v23, -inf }
 0x557   : > { %1092 = vmax.xlane.f32.xlu0 %v1091_v25  ;;  %v3466_v26 = vpop.f32.mrf.mxu1  ;;  %v2601_v30 = vpop.f32.mrf.mxu0 }
 0x559   : > { %v2588_v31 = vpop.f32.mrf.mxu1 }
 0x55b   : > { %v938_v32 = vpop.f32.mrf.mxu1 }
 0x55d   : > { %v2589_v35 = vpop.f32.mrf.mxu1 }
 0x55f   : > { %v3468_v36 = vpop.f32.mrf.mxu1 }
 0x561   : > { %v2594_v38 = vpop.f32.mrf.mxu1 }
 0x563   : > { %v984_v39 = vpop.f32.mrf.mxu1 }
 0x565   : > { %v2595_v40 = vpop.f32.mrf.mxu1 }
 0x567   : > { %v1081_v41 = vpop.f32.mrf.mxu1 }
 0x568   : > { %v1088_v42 = vmul.f32 0.17677669, %v1081_v41 }
 0x569   : > { %v2606_v43 = vpop.f32.mrf.mxu1 }
 0x56a   : > { %v1090_v44 = vadd.f32 %v3427_v45, %v1088_v42 }
 0x56b   : > { %v1084_v46 = vpop.f32.mrf.mxu1 }
 0x56c   : > { %v1094_v47 = vsel %vm869_vm7, %v1090_v44, -inf }
 0x56d   : > { %1095 = vmax.xlane.f32.xlu1 %v1094_v47  ;;  %v2607_v48 = vpop.f32.mrf.mxu1 }
 0x57e   : > { %1163 = vrot.lane.b32.xlu1 %v3448_v9, %s3075_s4 }
 0x582   : > { %1213 = vrot.lane.b32.xlu1 %v3388_v20, %s3076_s24 }
 0x586   : > { %1263 = vrot.lane.b32.xlu1 %v3395_v27, %s3076_s24 }
 0x58a   : > { %1261 = vrot.lane.b32.xlu1 %v3408_v34, %s3076_s24 }
 0x5e0   : > { %v1093_v49 = vpop.xlane.xlu0 %1092 }
 0x5e1   : > { %v1097_v50 = vsub.f32 %v1089_v23, %v1093_v49 }
 0x5e3   : > { %v1099_v51 = vmul.f32 1.442695, %v1097_v50 }
 0x5e5   : > { %2868 = vpow2.f32 %v1099_v51 }
 0x5f2   : > { %v2869_v52 = vpop.eup %2868 }
 0x5f3   : > { %v1103_v53 = vsel %vm869_vm7, %v2869_v52, 0.0 }
 0x5f4   : > { %1104 = vadd.xlane.f32.xlu0 %v1103_v53 }
 0x5f6   : > { %v1096_v54 = vpop.xlane.xlu1 %1095 }
 0x5f7   : > { %v1098_v58 = vsub.f32 %v1090_v44, %v1096_v54 }
 0x5f9   : > { %v1101_v59 = vmul.f32 1.442695, %v1098_v58 }
 0x5fa   : > { %v1164_v60 = vpop.permute.xlu1 %1163 }
 0x5fb   : > { %2870 = vpow2.f32 %v1101_v59  ;;  %v1169_v62 = vsel %vm897_vm6, %v1164_v60, 0 }
 0x5fc   : > { %2615 = vmatpush3.bf16.msra.mxu1 %v1169_v62 }
 0x5fd   : > { %2626 = vmatprep.subr.bf16.mxu1 %v3072_v15 }
 0x5fe   : > { %v1214_v7 = vpop.permute.xlu1 %1213 }
 0x5ff   : > { %v1219_v10 = vsel %vm760_vm5, %v1214_v7, 0 }
 0x602   : > { %v1264_v13 = vpop.permute.xlu1 %1263 }
 0x603   : > { %v1269_v17 = vsel %vm760_vm5, %v1264_v13, 0 }
 0x606   : > { %v1262_v18 = vpop.permute.xlu1 %1261 }
 0x608   : > { %v2871_v63 = vpop.eup %2870 }
 0x609   : > { %v1106_v0 = vsel %vm869_vm7, %v2871_v63, 0.0 }
 0x60a   : > { %1107 = vadd.xlane.f32.xlu0 %v1106_v0 }
 0x620   : > { %1115 = vrot.lane.b32.xlu0 %v3406_v33, %s3075_s4 }
 0x624   : > { %1211 = vrot.lane.b32.xlu0 %v3397_v28, %s3076_s24 }
 0x67d   : > { %v1105_v1 = vpop.xlane.xlu0 %1104 }
 0x67e   : > { %2872 = vrcp.f32 %v1105_v1 }
 0x68b   : > { %v2873_v2 = vpop.eup %2872 }
 0x68c   : > { %v1111_v4 = vmul.f32 %v2873_v2, %v2869_v52 }
 0x68e   : > { %v1113_v8 = vpack.c.bf16 %v1111_v4, %v1111_v4 }
 0x693   : > { %v1108_v3 = vpop.xlane.xlu0 %1107 }
 0x694   : > { %2874 = vrcp.f32 %v1108_v3 }
 0x697   : > { %v1116_v5 = vpop.permute.xlu0 %1115 }
 0x698   : > { %v1121_v6 = vsel %vm897_vm6, %v1116_v5, 0 }
 0x699   : > { %2609 = vmatpush3.bf16.msra.mxu0 %v1121_v6 }
 0x69a   : > { %2620 = vmatprep.subr.bf16.mxu0 %v3072_v15 }
 0x69b   : > { %v1212_v14 = vpop.permute.xlu0 %1211 }
 0x69c   : > { %2611 = vmatmul.mubr.msk.bf16.vlgmr.msra.gmra.mxu0 %vm869_vm7, %v1113_v8 }
 0x69d   : > { %2621 = vmatpush3.bf16.xpose.msra.mxu0 %v1219_v10  ;;  %2622 = vmatprep.mubr.msk.bf16.mxu0 %vm3074_vm0, %v3072_v15 }
 0x69e   : > { %2632 = vmatprep.subr.bf16.mxu0 %v3072_v15 }
 0x6a1   : > { %v2875_v11 = vpop.eup %2874 }
 0x6a2   : > { %v1112_v12 = vmul.f32 %v2875_v11, %v2871_v63 }
 0x6a4   : > { %2623 = vmatmul.mubr.msk.bf16.vlgmr.msra.gmra.mxu0 %vm760_vm5, %v1212_v14  ;;  %v1114_v16 = vpack.c.bf16 %v1112_v12, %v1112_v12 }
 0x6a5   : > { %2634 = vmatprep.mubr.msk.bf16.mxu0 %vm3074_vm0, %v3072_v15 }
 0x6a6   : > { %2617 = vmatmul.mubr.msk.bf16.vlgmr.msra.gmra.mxu1 %vm869_vm7, %v1114_v16 }
 0x6a7   : > { %2627 = vmatpush3.bf16.xpose.msra.mxu1 %v1269_v17  ;;  %2628 = vmatprep.mubr.msk.bf16.mxu1 %vm3074_vm0, %v3072_v15 }
 0x6a8   : > { %2638 = vmatprep.subr.bf16.mxu1 %v3072_v15 }
 0x6ae   : > { %2629 = vmatmul.mubr.msk.bf16.vlgmr.msra.gmra.mxu1 %vm760_vm5, %v1262_v18 }
 0x6af   : > { %2640 = vmatprep.mubr.msk.bf16.mxu1 %vm3074_vm0, %v3072_v15 }
 0x75c   : > { %v3506_v19 = vpop.f32.mrf.mxu0 }
 0x75e   : > { %v2612_v21 = vpop.f32.mrf.mxu0 }
 0x760   : > { %v1160_v22 = vpop.f32.mrf.mxu0 }
 0x762   : > { %v2613_v23 = vpop.f32.mrf.mxu0 }
 0x764   : > { %v1255_v24 = vpop.f32.mrf.mxu0 }
 0x765   : > { %v1311_v25 = vmul.f32 0.17677669, %v1255_v24 }
 0x766   : > { %v3508_v30 = vpop.f32.mrf.mxu1  ;;  %v2624_v31 = vpop.f32.mrf.mxu0 }
 0x767   : > { %v2757_v32 = vpack.i.bf16 %v3508_v30, %v3506_v19  ;;  %v1313_v35 = vadd.f32 %v3420_v37, %v1311_v25 }
 0x768   : > { %v2618_v38 = vpop.f32.mrf.mxu1  ;;  %v1258_v39 = vpop.f32.mrf.mxu0 }
 0x769   : > { %v1315_v40 = vsel %vm869_vm7, %v1313_v35, -inf }
 0x76a   : > { %1316 = vmax.xlane.f32.xlu0 %v1315_v40  ;;  %v1208_v41 = vpop.f32.mrf.mxu1  ;;  %v2625_v42 = vpop.f32.mrf.mxu0 }
 0x76c   : > { %v2619_v43 = vpop.f32.mrf.mxu1 }
 0x76e   : > { %v1305_v44 = vpop.f32.mrf.mxu1 }
 0x76f   : > { %v1312_v46 = vmul.f32 0.17677669, %v1305_v44 }
 0x770   : > { %v2630_v47 = vpop.f32.mrf.mxu1 }
 0x771   : > { %v1314_v48 = vadd.f32 %v3427_v45, %v1312_v46 }
 0x772   : > { %v1308_v49 = vpop.f32.mrf.mxu1 }
 0x773   : > { %v1318_v50 = vsel %vm869_vm7, %v1314_v48, -inf }
 0x774   : > { %1319 = vmax.xlane.f32.xlu1 %v1318_v50  ;;  %v2631_v51 = vpop.f32.mrf.mxu1 }
 0x785   : > { %1387 = vrot.lane.b32.xlu1 %v3448_v9, %s3076_s24 }
 0x789   : > { %1437 = vrot.lane.b32.xlu1 %v3388_v20, %s3077_s17 }
 0x78d   : > { %1487 = vrot.lane.b32.xlu1 %v3395_v27, %s3077_s17 }
 0x791   : > { %1485 = vrot.lane.b32.xlu1 %v3408_v34, %s3077_s17 }
 0x7f3   : > { %v1317_v52 = vpop.xlane.xlu0 %1316 }
 0x7f4   : > { %v1321_v53 = vsub.f32 %v1313_v35, %v1317_v52 }
 0x7f6   : > { %v1323_v54 = vmul.f32 1.442695, %v1321_v53 }
 0x7f8   : > { %2876 = vpow2.f32 %v1323_v54 }
 0x7fd   : > { %v1320_v58 = vpop.xlane.xlu1 %1319 }
 0x7fe   : > { %v1322_v59 = vsub.f32 %v1314_v48, %v1320_v58 }
 0x800   : > { %v1325_v60 = vmul.f32 1.442695, %v1322_v59 }
 0x801   : > { %v1388_v62 = vpop.permute.xlu1 %1387 }
 0x802   : > { %2878 = vpow2.f32 %v1325_v60  ;;  %v1393_v63 = vsel %vm897_vm6, %v1388_v62, 0 }
 0x803   : > { %2639 = vmatpush3.bf16.msra.mxu1 %v1393_v63 }
 0x804   : > { %2650 = vmatprep.subr.bf16.mxu1 %v3072_v15 }
 0x805   : > { %v2877_v20 = vpop.eup %2876  ;;  %v1438_v7 = vpop.permute.xlu1 %1437 }
 0x806   : > { %v1327_v27 = vsel %vm869_vm7, %v2877_v20, 0.0  ;;  %v1443_v10 = vsel %vm760_vm5, %v1438_v7, 0  ;;  %v2805_v7 = vld [vmem:[%s3283_s30 + $0xcc] ss:$16 sps:$4 sm:$0xff]  }
 0x807   : > { %1328 = vadd.xlane.f32.xlu0 %v1327_v27 }
 0x809   : > { %v1488_v12 = vpop.permute.xlu1 %1487 }
 0x80a   : > { %v1493_v16 = vsel %vm760_vm5, %v1488_v12, 0 }
 0x80d   : > { %v1486_v17 = vpop.permute.xlu1 %1485 }
 0x80f   : > { %v2879_v0 = vpop.eup %2878 }
 0x810   : > { %v1330_v34 = vsel %vm869_vm7, %v2879_v0, 0.0 }
 0x811   : > { %1331 = vadd.xlane.f32.xlu0 %v1330_v34 }
 0x827   : > { %1339 = vrot.lane.b32.xlu0 %v3406_v33, %s3076_s24 }
 0x82b   : > { %1435 = vrot.lane.b32.xlu0 %v3397_v28, %s3077_s17 }
 0x890   : > { %v1329_v1 = vpop.xlane.xlu0 %1328 }
 0x891   : > { %2880 = vrcp.f32 %v1329_v1 }
 0x89a   : > { %v1332_v2 = vpop.xlane.xlu0 %1331 }
 0x89b   : > { %2882 = vrcp.f32 %v1332_v2 }
 0x89e   : > { %v2881_v3 = vpop.eup %2880  ;;  %v1340_v4 = vpop.permute.xlu0 %1339 }
 0x89f   : > { %v1345_v5 = vsel %vm897_vm6, %v1340_v4, 0  ;;  %v1335_v6 = vmul.f32 %v2881_v3, %v2877_v20 }
 0x8a0   : > { %2633 = vmatpush3.bf16.msra.mxu0 %v1345_v5 }
 0x8a1   : > { %v1337_v8 = vpack.c.bf16 %v1335_v6, %v1335_v6  ;;  %2644 = vmatprep.subr.bf16.mxu0 %v3072_v15  ;;  %v2804_v6 = vld [vmem:[%s3283_s30 + $0xec] ss:$16 sps:$4 sm:$0xff]  }
 0x8a2   : > { %v1436_v13 = vpop.permute.xlu0 %1435 }
 0x8a3   : > { %2635 = vmatmul.mubr.msk.bf16.vlgmr.msra.gmra.mxu0 %vm869_vm7, %v1337_v8  ;;  %v2806_v8 = vld [vmem:[%s3283_s30 + $0xac] ss:$16 sps:$4 sm:$0xff]  }
 0x8a4   : > { %2645 = vmatpush3.bf16.xpose.msra.mxu0 %v1443_v10  ;;  %2646 = vmatprep.mubr.msk.bf16.mxu0 %vm3074_vm0, %v3072_v15  ;;  %v2807_v10 = vld [vmem:[%s3283_s30 + $0x8c] ss:$16 sps:$4 sm:$0xff]  }
 0x8a5   : > { %2656 = vmatprep.subr.bf16.mxu0 %v3072_v15 }
 0x8a8   : > { %v2883_v28 = vpop.eup %2882 }
 0x8a9   : > { %v1336_v11 = vmul.f32 %v2883_v28, %v2879_v0  ;;  %v2808_v28 = vld [vmem:[%s3283_s30 + $0x6c] ss:$16 sps:$4 sm:$0xff]  }
 0x8ab   : > { %2647 = vmatmul.mubr.msk.bf16.vlgmr.msra.gmra.mxu0 %vm760_vm5, %v1436_v13  ;;  %v1338_v14 = vpack.c.bf16 %v1336_v11, %v1336_v11  ;;  %v2810_v11 = vld [vmem:[%s3283_s30 + $0x2c] ss:$16 sps:$4 sm:$0xff]  }
 0x8ac   : > { %2658 = vmatprep.mubr.msk.bf16.mxu0 %vm3074_vm0, %v3072_v15  ;;  %v2811_v13 = vld [vmem:[%s3283_s30 + $0xc] ss:$16 sps:$4 sm:$0xff]  }
 0x8ad   : > { %2641 = vmatmul.mubr.msk.bf16.vlgmr.msra.gmra.mxu1 %vm869_vm7, %v1338_v14 }
 0x8ae   : > { %2651 = vmatpush3.bf16.xpose.msra.mxu1 %v1493_v16  ;;  %2652 = vmatprep.mubr.msk.bf16.mxu1 %vm3074_vm0, %v3072_v15 }
 0x8af   : > { %2662 = vmatprep.subr.bf16.mxu1 %v3072_v15 }
 0x8b5   : > { %2653 = vmatmul.mubr.msk.bf16.vlgmr.msra.gmra.mxu1 %vm760_vm5, %v1486_v17 }
 0x8b6   : > { %2664 = vmatprep.mubr.msk.bf16.mxu1 %vm3074_vm0, %v3072_v15 }
 0x963   : > { %v1381_v18 = vpop.f32.mrf.mxu0 }
 0x965   : > { %v2636_v21 = vpop.f32.mrf.mxu0 }
 0x967   : > { %v1384_v22 = vpop.f32.mrf.mxu0 }
 0x969   : > { %v2637_v23 = vpop.f32.mrf.mxu0 }
 0x96b   : > { %v1479_v24 = vpop.f32.mrf.mxu0 }
 0x96c   : > { %v1535_v25 = vmul.f32 0.17677669, %v1479_v24 }
 0x96d   : > { %v1429_v31 = vpop.f32.mrf.mxu1  ;;  %v2648_v35 = vpop.f32.mrf.mxu0 }
 0x96e   : > { %v1537_v38 = vadd.f32 %v3420_v37, %v1535_v25  ;;  %v2762_v37 = vpack.i.bf16 %v1429_v31, %v1381_v18 }
 0x96f   : > { %v2642_v39 = vpop.f32.mrf.mxu1  ;;  %v1482_v40 = vpop.f32.mrf.mxu0 }
 0x970   : > { %v1539_v41 = vsel %vm869_vm7, %v1537_v38, -inf }
 0x971   : > { %1540 = vmax.xlane.f32.xlu0 %v1539_v41  ;;  %v1432_v42 = vpop.f32.mrf.mxu1  ;;  %v2649_v43 = vpop.f32.mrf.mxu0 }
 0x973   : > { %v2643_v44 = vpop.f32.mrf.mxu1 }
 0x975   : > { %v1529_v46 = vpop.f32.mrf.mxu1 }
 0x976   : > { %v1536_v47 = vmul.f32 0.17677669, %v1529_v46 }
 0x977   : > { %v2654_v48 = vpop.f32.mrf.mxu1 }
 0x978   : > { %v1538_v49 = vadd.f32 %v3427_v45, %v1536_v47 }
 0x979   : > { %v1532_v50 = vpop.f32.mrf.mxu1 }
 0x97a   : > { %v1542_v51 = vsel %vm869_vm7, %v1538_v49, -inf }
 0x97b   : > { %1543 = vmax.xlane.f32.xlu1 %v1542_v51  ;;  %v2655_v52 = vpop.f32.mrf.mxu1  ;;  %v1694_v51 = vsub.s32 7, %v3362_v55 }
 0x97d   : > { %v1695_v52 = vrot.slane %v3368_v57, %v1694_v51 }
 0x98c   : > { %1611 = vrot.lane.b32.xlu1 %v3448_v9, %s3077_s17 }
 0x990   : > { %2758 = vrot.lane.b32.xlu1 %v2757_v32, %s3077_s17 }
 0x994   : > { %2763 = vrot.lane.b32.xlu1 %v2762_v37, %s3076_s24 }
 0x9fa   : > { %v1541_v53 = vpop.xlane.xlu0 %1540 }
 0x9fb   : > { %v1545_v54 = vsub.f32 %v1537_v38, %v1541_v53 }
 0x9fd   : > { %v1547_v58 = vmul.f32 1.442695, %v1545_v54 }
 0x9ff   : > { %2884 = vpow2.f32 %v1547_v58  ;;  %v2900_v58 = vld [vmem:[#allocation2] sm:$0xff] }
 0xa04   : > { %v1544_v45 = vpop.xlane.xlu1 %1543 }
 0xa05   : > { %v1546_v59 = vsub.f32 %v1538_v49, %v1544_v45 }
 0xa07   : > { %v1549_v60 = vmul.f32 1.442695, %v1546_v59 }
 0xa08   : > { %v1612_v62 = vpop.permute.xlu1 %1611 }
 0xa09   : > { %2886 = vpow2.f32 %v1549_v60  ;;  %v1617_v63 = vsel %vm897_vm6, %v1612_v62, 0  ;;  %v2901_v60 = vld [vmem:[#allocation2 + $0x8] sm:$0xff] }
 0xa0a   : > { %2663 = vmatpush3.bf16.msra.mxu1 %v1617_v63 }
 0xa0c   : > { %v2885_v9 = vpop.eup %2884  ;;  %v2759_v25 = vpop.permute.xlu1 %2758 }
 0xa0d   : > { %v1551_v20 = vsel %vm869_vm7, %v2885_v9, 0.0  ;;  %v2761_v35 = vunpack.i.h.bf16 %v2759_v25  ;;  %v2760_v38 = vunpack.i.l.bf16 %v2759_v25  ;;  %v2844_v25 = vld [vmem:[%s3308_s19 + $0x58] sm:$0xff]  }
 0xa0e   : > { %1552 = vadd.xlane.f32.xlu0 %v1551_v20 }
 0xa0f   : > { %v1684_v41 = vsel %vm760_vm5, %v3468_v36, %v2761_v35  ;;  %v1683_v42 = vsel %vm760_vm5, %v3466_v26, %v2760_v38 }
 0xa10   : > { %v2764_v31 = vpop.permute.xlu1 %2763 }
 0xa11   : > { %v2766_v39 = vunpack.i.h.bf16 %v2764_v31  ;;  %v2765_v40 = vunpack.i.l.bf16 %v2764_v31  ;;  %v2845_v31 = vld [vmem:[%s3308_s19 + $0x18] sm:$0xff]  }
 0xa13   : > { %v1686_v46 = vsel %vm1685_vm8, %v1683_v42, %v2765_v40  ;;  %v1687_v47 = vsel %vm1685_vm8, %v1684_v41, %v2766_v39 }
 0xa16   : > { %v2887_v19 = vpop.eup %2886 }
 0xa17   : > { %v1554_v30 = vsel %vm869_vm7, %v2887_v19, 0.0 }
 0xa18   : > { %1555 = vadd.xlane.f32.xlu0 %v1554_v30 }
 0xa2e   : > { %1563 = vrot.lane.b32.xlu0 %v3406_v33, %s3077_s17 }
 0xa97   : > { %v1553_v32 = vpop.xlane.xlu0 %1552 }
 0xa98   : > { %2888 = vrcp.f32 %v1553_v32 }
 0xaa1   : > { %v1556_v27 = vpop.xlane.xlu0 %1555 }
 0xaa2   : > { %2890 = vrcp.f32 %v1556_v27 }
 0xaa5   : > { %v2889_v0 = vpop.eup %2888  ;;  %v1564_v34 = vpop.permute.xlu0 %1563 }
 0xaa6   : > { %v1569_v1 = vsel %vm897_vm6, %v1564_v34, 0  ;;  %v1559_v2 = vmul.f32 %v2889_v0, %v2885_v9  ;;  %v2814_v34 = vld [vmem:[%s3290_s13 + $0x74] ss:$8 sps:$4 sm:$0xff]  }
 0xaa7   : > { %2657 = vmatpush3.bf16.msra.mxu0 %v1569_v1  ;;  %v2812_v1 = vld [vmem:[%s3290_s13 + $0x70] ss:$8 sps:$4 sm:$0xff]   ;;  %1944 = vmatprep.subr.bf16.mxu1 %v2814_v34  ;;  %v2848_v34 = vld [vmem:[%s3308_s19 + $0x48] sm:$0xff]  }
 0xaa8   : > { %v1561_v3 = vpack.c.bf16 %v1559_v2, %v1559_v2  ;;  %2668 = vmatprep.subr.bf16.mxu0 %v3072_v15  ;;  %v2817_v2 = vld [vmem:[%s3290_s13 + $0x64] ss:$8 sps:$4 sm:$0xff]  }
 0xaaa   : > { %2659 = vmatmul.mubr.msk.bf16.vlgmr.msra.gmra.mxu0 %vm869_vm7, %v1561_v3  ;;  %v2815_v3 = vld [vmem:[%s3290_s13 + $0x60] ss:$8 sps:$4 sm:$0xff]  }
 0xaab   : > { %2684 = vmatprep.mubr.msk.bf16.mxu0 %vm3074_vm0, %v3072_v15  ;;  %2669 = vmatpush3.bf16.msra.mxu0 %v2804_v6  ;;  %v2823_v6 = vld [vmem:[%s3290_s13 + $0x44] ss:$8 sps:$4 sm:$0xff]  }
 0xaac   : > { %2670 = vmatprep.subr.bf16.mxu0 %v3072_v15 }
 0xaaf   : > { %v2891_v33 = vpop.eup %2890  ;;  %2671 = vmatpush3.bf16.msra.mxu0 %v2805_v7  ;;  %v2826_v7 = vld [vmem:[%s3290_s13 + $0x34] ss:$8 sps:$4 sm:$0xff]  }
 0xab0   : > { %v1560_v4 = vmul.f32 %v2891_v33, %v2887_v19  ;;  %2672 = vmatprep.subr.bf16.mxu0 %v3072_v15  ;;  %v2820_v33 = vld [vmem:[%s3290_s13 + $0x54] ss:$8 sps:$4 sm:$0xff]  }
 0xab2   : > { %v1562_v5 = vpack.c.bf16 %v1560_v4, %v1560_v4  ;;  %v2818_v4 = vld [vmem:[%s3290_s13 + $0x50] ss:$8 sps:$4 sm:$0xff]  }
 0xab3   : > { %2673 = vmatpush3.bf16.msra.mxu0 %v2806_v8  ;;  %v2824_v8 = vld [vmem:[%s3290_s13 + $0x30] ss:$8 sps:$4 sm:$0xff]  }
 0xab4   : > { %2665 = vmatmul.mubr.msk.bf16.vlgmr.msra.gmra.mxu1 %vm869_vm7, %v1562_v5  ;;  %2674 = vmatprep.subr.bf16.mxu0 %v3072_v15  ;;  %v2821_v5 = vld [vmem:[%s3290_s13 + $0x40] ss:$8 sps:$4 sm:$0xff]  }
 0xab5   : > { %1976 = vmatprep.mubr.bf16.mxu1 %v3073_v29  ;;  %v2809_v29 = vld [vmem:[%s3283_s30 + $0x4c] ss:$16 sps:$4 sm:$0xff]   ;;  %1945 = vmatpush1.bf16.msra.mxu1 %v2812_v1 }
 0xab6   : > { %1946 = vmatprep.subr.bf16.mxu1 %v2817_v2  ;;  %v2849_v1 = vld [vmem:[%s3308_s19 + $0x8] sm:$0xff]   ;;  %v2851_v2 = vld [vmem:[%s3308_s19] sm:$0xff]  }
 0xab7   : > { %2675 = vmatpush3.bf16.msra.mxu0 %v2807_v10  ;;  %v2829_v10 = vld [vmem:[%s3290_s13 + $0x24] ss:$8 sps:$4 sm:$0xff]  }
 0xab8   : > { %2676 = vmatprep.subr.bf16.mxu0 %v3072_v15 }
 0xab9   : > { %1947 = vmatpush1.bf16.msra.mxu1 %v2815_v3  ;;  %v1852_v3 = vld [vmem:[%s3306_s14] sm:$0x3] }
 0xaba   : > { %1948 = vmatprep.subr.bf16.mxu1 %v2820_v33 }
 0xabb   : > { %2677 = vmatpush3.bf16.msra.mxu0 %v2808_v28  ;;  %v2827_v28 = vld [vmem:[%s3290_s13 + $0x20] ss:$8 sps:$4 sm:$0xff]  }
 0xabc   : > { %2678 = vmatprep.subr.bf16.mxu0 %v3072_v15 }
 0xabd   : > { %1949 = vmatpush1.bf16.msra.mxu1 %v2818_v4 }
 0xabe   : > { %1950 = vmatprep.subr.bf16.mxu1 %v2823_v6 }
 0xabf   : > { %2679 = vmatpush3.bf16.msra.mxu0 %v2809_v29  ;;  %v2832_v29 = vld [vmem:[%s3290_s13 + $0x14] ss:$8 sps:$4 sm:$0xff]  }
 0xac0   : > { %2680 = vmatprep.subr.bf16.mxu0 %v3072_v15 }
 0xac1   : > { %1951 = vmatpush1.bf16.msra.mxu1 %v2821_v5  ;;  %v1857_v5 = vrot.slane %v1852_v3, %v3365_v56 }
 0xac2   : > { %1952 = vmatprep.subr.bf16.mxu1 %v2826_v7 }
 0xac3   : > { %2681 = vmatpush3.bf16.msra.mxu0 %v2810_v11  ;;  %v2830_v11 = vld [vmem:[%s3290_s13 + $0x10] ss:$8 sps:$4 sm:$0xff]  }
 0xac4   : > { %2682 = vmatprep.subr.bf16.mxu0 %v3072_v15 }
 0xac5   : > { %1953 = vmatpush1.bf16.msra.mxu1 %v2824_v8 }
 0xac6   : > { %1954 = vmatprep.subr.bf16.mxu1 %v2829_v10 }
 0xac7   : > { %2683 = vmatpush3.bf16.msra.mxu0 %v2811_v13  ;;  %v2833_v13 = vld [vmem:[%s3290_s13] ss:$8 sps:$4 sm:$0xff]  }
 0xac9   : > { %1955 = vmatpush1.bf16.msra.mxu1 %v2827_v28 }
 0xaca   : > { %1956 = vmatprep.subr.bf16.mxu1 %v2832_v29 }
 0xacd   : > { %1957 = vmatpush1.bf16.msra.mxu1 %v2830_v11 }
 0xb6a   : > { %v1605_v12 = vpop.f32.mrf.mxu0 }
 0xb6c   : > { %v2660_v14 = vpop.f32.mrf.mxu0 }
 0xb6d   : > { %v2836_v14 = vld [vmem:[%s3308_s19 + $0x78] sm:$0xff]  }
 0xb6e   : > { %v1608_v16 = vpop.f32.mrf.mxu0  ;;  %2530 = vmatprep.subr.bf16.mxu0 %v2836_v14 }
 0xb6f   : > { %v2837_v16 = vld [vmem:[%s3308_s19 + $0x38] sm:$0xff]  }
 0xb70   : > { %v2661_v17 = vpop.f32.mrf.mxu0 }
 0xb71   : > { %v2838_v17 = vld [vmem:[%s3308_s19 + $0x70] sm:$0xff]  }
 0xb74   : > { %v1653_v18 = vpop.f32.mrf.mxu1 }
 0xb75   : > { %v2767_v21 = vpack.i.bf16 %v1653_v18, %v1605_v12  ;;  %v2835_v12 = vld [vmem:[%s3290_s13 + $0x4] ss:$8 sps:$4 sm:$0xff]   ;;  %v2839_v18 = vld [vmem:[%s3308_s19 + $0x30] sm:$0xff]  }
 0xb76   : > { %v2666_v22 = vpop.f32.mrf.mxu1  ;;  %1958 = vmatprep.subr.bf16.mxu1 %v2835_v12 }
 0xb77   : > { %2768 = vrot.lane.b32.xlu0 %v2767_v21, %s3075_s4  ;;  %1959 = vmatpush1.bf16.msra.mxu1 %v2833_v13  ;;  %v2840_v21 = vld [vmem:[%s3308_s19 + $0x68] sm:$0xff]  }
 0xb78   : > { %v1656_v23 = vpop.f32.mrf.mxu1  ;;  %v2841_v22 = vld [vmem:[%s3308_s19 + $0x28] sm:$0xff]  }
 0xb79   : > { %v2842_v23 = vld [vmem:[%s3308_s19 + $0x60] sm:$0xff]  }
 0xb7a   : > { %v2667_v24 = vpop.f32.mrf.mxu1 }
 0xb7b   : > { %v2843_v24 = vld [vmem:[%s3308_s19 + $0x20] sm:$0xff]  }
 0xbe9   : > { %v2769_v15 = vpop.permute.xlu0 %2768 }
 0xbea   : > { %v2771_v43 = vunpack.i.h.bf16 %v2769_v15  ;;  %v2770_v44 = vunpack.i.l.bf16 %v2769_v15 }
 0xbec   : > { %v1690_v48 = vsel %vm1688_vm9, %v1687_v47, %v2771_v43  ;;  %v1689_v49 = vsel %vm1688_vm9, %v1686_v46, %v2770_v44 }
 0xbed   : > { %v1691_v50 = vpack.c.bf16 %v1690_v48, %v1689_v49 }
 0xbef   : > { %2685 = vmatmul.mubr.bf16.vlgmr.msra.gmra.mxu0 %v1691_v50 }
 0xbf0   : > { %2531 = vmatpush3.bf16.msra.mxu0 %v2837_v16 }
 0xbf1   : > { %2532 = vmatprep.subr.bf16.mxu0 %v2838_v17 }
 0xbf4   : > { %2533 = vmatpush3.bf16.msra.mxu0 %v2839_v18 }
 0xbf5   : > { %2534 = vmatprep.subr.bf16.mxu0 %v2840_v21  ;;  %v413_v21 = vld [vmem:[%s3301_s11 + $0x8] sm:$0x7] }
 0xbf8   : > { %2535 = vmatpush3.bf16.msra.mxu0 %v2841_v22 }
 0xbf9   : > { %2536 = vmatprep.subr.bf16.mxu0 %v2842_v23  ;;  %v2028_v23 = vrot.slane %v413_v21, %v3365_v56 }
 0xbfc   : > { %2537 = vmatpush3.bf16.msra.mxu0 %v2843_v24 }
 0xbfd   : > { %2538 = vmatprep.subr.bf16.mxu0 %v2844_v25 }
 0xc00   : > { %2539 = vmatpush3.bf16.msra.mxu0 %v2845_v31 }
 0xcaf   : > { %v1778_v37 = vpop.f32.mrf.mxu0 }
 0xcb0   : > { %v1779_v53 = vadd.f32 %v1778_v37, %v1695_v52  ;;  %v3638_v37 = vsub.s32 1, %v3362_v55 }
 0xcb1   : > { %v2686_v54 = vpop.f32.mrf.mxu0 }
 0xcb2   : > { %v3595_v36 = vadd.f32 %v2900_v58, %v1779_v53  ;;  %v1826_v58 = vrot.slane %v3368_v57, %v3638_v37  ;;  %v2847_v57 = vld [vmem:[%s3308_s19 + $0x10] sm:$0xff]   ;;  %v1861_v4 = vrot.slane %v1852_v3, %v3638_v37 }
 0xcb3   : > { %v1781_v45 = vpop.f32.mrf.mxu0 }
 0xcb4   : > { %v1782_v26 = vadd.f32 %v1781_v45, %v1695_v52  ;;  %1787 = vadd.xlane.f32.xlu1 %v3595_v36  ;;  %v1831_v45 = vsub.s32 3, %v3362_v55 }
 0xcb5   : > { %v2687_v59 = vpop.f32.mrf.mxu0 }
 0xcb6   : > { %v3598_v62 = vadd.f32 %v2901_v60, %v1782_v26 }
 0xcb8   : > { %1789 = vadd.xlane.f32.xlu0 %v3598_v62 }
 0xd3d   : > { %v1788_v63 = vpop.xlane.xlu1 %1787 }
 0xd3e   : > { %v1791_v9 = vmul.f32 0.0078125, %v1788_v63  ;;  %v2902_v63 = vld [vmem:[%s3301_s11] sm:$0xff] }
 0xd40   : > { %v3602_v20 = vsub.f32 %v3595_v36, %v1791_v9  ;;  %v1832_v9 = vrot.slane %v2902_v63, %v1831_v45 }
 0xd41   : > { %v1790_v19 = vpop.xlane.xlu0 %1789 }
 0xd42   : > { %v1792_v30 = vmul.f32 0.0078125, %v1790_v19  ;;  %v1795_v32 = vmul.f32 %v3602_v20, %v3602_v20 }
 0xd44   : > { %v3607_v27 = vsub.f32 %v3598_v62, %v1792_v30  ;;  %1797 = vadd.xlane.f32.xlu0 %v1795_v32 }
 0xd46   : > { %v1796_v0 = vmul.f32 %v3607_v27, %v3607_v27 }
 0xd48   : > { %1799 = vadd.xlane.f32.xlu0 %v1796_v0  ;;  %v2846_v0 = vld [vmem:[%s3308_s19 + $0x50] sm:$0xff]  }
 0xd49   : > { %2540 = vmatprep.subr.bf16.mxu0 %v2846_v0 }
 0xd4a   : > { %2541 = vmatpush3.bf16.msra.mxu0 %v2847_v57 }
 0xd4b   : > { %2542 = vmatprep.subr.bf16.mxu0 %v2848_v34 }
 0xd4e   : > { %2543 = vmatpush3.bf16.msra.mxu0 %v2849_v1 }
 0xdcd   : > { %v1798_v35 = vpop.xlane.xlu0 %1797 }
 0xdce   : > { %v1801_v38 = vmul.f32 0.007874016, %v1798_v35 }
 0xdd0   : > { %2892 = vrsqrt.f32 %v1801_v38  ;;  %vm1805_vm10 = vcmp.eq.f32.partialorder %v1801_v38, inf  ;;  %v1808_v42 = vand.u32 2147483648, %v1801_v38  ;;  %vm1807_vm11 = vcmp.eq.f32.partialorder %v1801_v38, 0.0 }
 0xdd1   : > { %v1800_v39 = vpop.xlane.xlu0 %1799 }
 0xdd2   : > { %v1802_v40 = vmul.f32 0.007874016, %v1800_v39 }
 0xdd4   : > { %2894 = vrsqrt.f32 %v1802_v40  ;;  %vm1812_vm12 = vcmp.eq.f32.partialorder %v1802_v40, inf  ;;  %v1815_v49 = vand.u32 2147483648, %v1802_v40  ;;  %vm1814_vm13 = vcmp.eq.f32.partialorder %v1802_v40, 0.0 }
 0xddd   : > { %v2893_v15 = vpop.eup %2892 }
 0xdde   : > { %v1804_v41 = vmul.f32 %v2893_v15, %v1801_v38 }
 0xde0   : > { %v1806_v43 = vsel %vm1805_vm10, %v1801_v38, %v1804_v41 }
 0xde1   : > { %v2895_v44 = vpop.eup %2894  ;;  %v1809_v46 = vsel %vm1807_vm11, %v1808_v42, %v1806_v43 }
 0xde2   : > { %v1817_v47 = vadd.f32 1e-06, %v1809_v46  ;;  %v1811_v48 = vmul.f32 %v2895_v44, %v1802_v40 }
 0xde4   : > { %2896 = vrcp.f32 %v1817_v47  ;;  %v1813_v50 = vsel %vm1812_vm12, %v1802_v40, %v1811_v48 }
 0xde5   : > { %v1816_v51 = vsel %vm1814_vm13, %v1815_v49, %v1813_v50 }
 0xde6   : > { %v1818_v52 = vadd.f32 1e-06, %v1816_v51 }
 0xde8   : > { %2898 = vrcp.f32 %v1818_v52 }
 0xdf1   : > { %v2897_v53 = vpop.eup %2896 }
 0xdf2   : > { %v1821_v54 = vmul.f32 %v2897_v53, %v3602_v20 }
 0xdf4   : > { %v1827_v60 = vmul.f32 %v1826_v58, %v1821_v54 }
 0xdf5   : > { %v2899_v26 = vpop.eup %2898 }
 0xdf6   : > { %v1822_v59 = vmul.f32 %v2899_v26, %v3607_v27  ;;  %v1833_v30 = vadd.f32 %v1832_v9, %v1827_v60  ;;  %v2850_v27 = vld [vmem:[%s3308_s19 + $0x40] sm:$0xff]  }
 0xdf7   : > { %2544 = vmatprep.subr.bf16.mxu0 %v2850_v27 }
 0xdf8   : > { %v1828_v19 = vmul.f32 %v1826_v58, %v1822_v59  ;;  %2545 = vmatpush3.bf16.msra.mxu0 %v2851_v2 }
 0xdfa   : > { %v1834_v32 = vadd.f32 %v1832_v9, %v1828_v19 }
 0xdfc   : > { %v1851_v20 = vpack.c.bf16 %v1834_v32, %v1833_v30 }
 0xdfe   : > { %1977 = vmatmul.mubr.bf16.vlgmr.msra.gmra.mxu1 %v1851_v20 }
 0xebe   : > { %v1978_v33 = vpop.f32.mrf.mxu1 }
 0xebf   : > { %v1979_v28 = vadd.f32 %v1978_v33, %v1857_v5 }
 0xec0   : > { %v1980_v6 = vpop.f32.mrf.mxu1 }
 0xec1   : > { %v1981_v8 = vadd.f32 %v1980_v6, %v1861_v4  ;;  %v1987_v16 = vmax.f32 %v1979_v28, 0.0 }
 0xec2   : > { %v1982_v7 = vpop.f32.mrf.mxu1 }
 0xec3   : > { %v1983_v10 = vadd.f32 %v1982_v7, %v1857_v5  ;;  %v1988_v13 = vmax.f32 %v1981_v8, 0.0 }
 0xec4   : > { %v1984_v29 = vpop.f32.mrf.mxu1 }
 0xec5   : > { %v1985_v11 = vadd.f32 %v1984_v29, %v1861_v4  ;;  %v1989_v12 = vmax.f32 %v1983_v10, 0.0 }
 0xec7   : > { %v1990_v14 = vmax.f32 %v1985_v11, 0.0  ;;  %v2023_v18 = vpack.c.bf16 %v1989_v12, %v1987_v16 }
 0xec9   : > { %v2024_v17 = vpack.c.bf16 %v1990_v14, %v1988_v13 }
 0xecb   : > { %2157 = vmatprep.mubr.bf16.mxu0 %v2024_v17 }
 0xecc   : > { %2158 = vmatmul.mubr.bf16.vlgmr.msra.gmra.mxu0 %v2023_v18 }
 0xf8c   : > { %v2546_v22 = vpop.f32.mrf.mxu0 }
 0xf8e   : > { %v2547_v24 = vpop.f32.mrf.mxu0 }
 0xf8f   : > { %v2548_v25 = vadd.f32 %v2547_v24, %v2546_v22 }
 0xf90   : > { %v2549_v31 = vpop.f32.mrf.mxu0 }
 0xf91   : > { %v2160_v35 = vadd.f32 %v2548_v25, %v2028_v23 }
 0xf92   : > { %v2550_v38 = vpop.f32.mrf.mxu0 }
 0xf93   : > { %v2166_v39 = vadd.f32 %v2160_v35, %v3595_v36  ;;  %v2551_v40 = vadd.f32 %v2550_v38, %v2549_v31 }
 0xf95   : > { %2168 = vst [vmem:[#allocation2] sm:$0xff] %v2166_v39  ;;  %v2163_v15 = vadd.f32 %v2551_v40, %v2028_v23  ;;  %2173 = sbr.rel (%p2460_p5) target bundleno = 4325 (0x10e5), region = 68 }
 0xf97   : > { %v2167_v41 = vadd.f32 %v2163_v15, %v3598_v62 }
 0xf99   : > { %2169 = vst [vmem:[#allocation2 + $0x8] sm:$0xff] %v2167_v41 }
 0xf9a   : > { %2174 = vadd.xlane.f32.xlu0 %v2166_v39  ;;  %v2213_v0 = vrot.slane %v413_v21, %v3638_v37  ;;  %v2219_v1 = vrot.slane %v413_v21, %v459_v61 }
 0xf9e   : > { %2176 = vadd.xlane.f32.xlu0 %v2167_v41 }
0x1023   : > { %v2175_v42 = vpop.xlane.xlu0 %2174 }
0x1024   : > { %v2178_v56 = vmul.f32 0.0078125, %v2175_v42 }
0x1026   : > { %v2180_v43 = vsub.f32 %v2166_v39, %v2178_v56 }
0x1027   : > { %v2177_v44 = vpop.xlane.xlu0 %2176 }
0x1028   : > { %v2179_v46 = vmul.f32 0.0078125, %v2177_v44  ;;  %v2182_v47 = vmul.f32 %v2180_v43, %v2180_v43 }
0x102a   : > { %v2181_v48 = vsub.f32 %v2167_v41, %v2179_v46  ;;  %2184 = vadd.xlane.f32.xlu1 %v2182_v47 }
0x102c   : > { %v2183_v36 = vmul.f32 %v2181_v48, %v2181_v48 }
0x102e   : > { %2186 = vadd.xlane.f32.xlu1 %v2183_v36 }
0x10b3   : > { %v2185_v49 = vpop.xlane.xlu1 %2184 }
0x10b4   : > { %v2188_v50 = vmul.f32 0.007874016, %v2185_v49 }
0x10b6   : > { %2903 = vrsqrt.f32 %v2188_v50  ;;  %vm2192_vm14 = vcmp.eq.f32.partialorder %v2188_v50, inf  ;;  %v2195_v54 = vand.u32 2147483648, %v2188_v50  ;;  %vm2194_vm15 = vcmp.eq.f32.partialorder %v2188_v50, 0.0 }
0x10b7   : > { %v2187_v62 = vpop.xlane.xlu1 %2186 }
0x10b8   : > { %v2189_v51 = vmul.f32 0.007874016, %v2187_v62 }
0x10ba   : > { %2905 = vrsqrt.f32 %v2189_v51  ;;  %vm2199_vm0 = vcmp.eq.f32.partialorder %v2189_v51, inf  ;;  %v2202_v63 = vand.u32 2147483648, %v2189_v51  ;;  %vm2201_vm1 = vcmp.eq.f32.partialorder %v2189_v51, 0.0 }
0x10c3   : > { %v2904_v52 = vpop.eup %2903 }
0x10c4   : > { %v2191_v53 = vmul.f32 %v2904_v52, %v2188_v50 }
0x10c6   : > { %v2193_v58 = vsel %vm2192_vm14, %v2188_v50, %v2191_v53 }
0x10c7   : > { %v2906_v45 = vpop.eup %2905  ;;  %v2196_v26 = vsel %vm2194_vm15, %v2195_v54, %v2193_v58 }
0x10c8   : > { %v2204_v59 = vadd.f32 1e-06, %v2196_v26  ;;  %v2198_v60 = vmul.f32 %v2906_v45, %v2189_v51 }
0x10ca   : > { %2907 = vrcp.f32 %v2204_v59  ;;  %v2200_v9 = vsel %vm2199_vm0, %v2189_v51, %v2198_v60 }
0x10cb   : > { %v2203_v19 = vsel %vm2201_vm1, %v2202_v63, %v2200_v9 }
0x10cc   : > { %v2205_v30 = vadd.f32 1e-06, %v2203_v19 }
0x10ce   : > { %2909 = vrcp.f32 %v2205_v30 }
0x10d7   : > { %v2908_v32 = vpop.eup %2907 }
0x10d8   : > { %v2208_v20 = vmul.f32 %v2908_v32, %v2180_v43 }
0x10da   : > { %v2214_v34 = vmul.f32 %v2213_v0, %v2208_v20 }
0x10db   : > { %v2910_v57 = vpop.eup %2909 }
0x10dc   : > { %v2209_v27 = vmul.f32 %v2910_v57, %v2181_v48  ;;  %v2220_v3 = vadd.f32 %v2219_v1, %v2214_v34 }
0x10de   : > { %v2215_v2 = vmul.f32 %v2213_v0, %v2209_v27 }
0x10e0   : > { %v2221_v33 = vadd.f32 %v2219_v1, %v2215_v2 }
0x10e2   : > { %v2478_v4 = vpack.c.bf16 %v2221_v33, %v2220_v3 }
0x10e4   : > { %2479 = vst [vmem:[#allocation9] sm:$0xff] %v2478_v4  }
0x10e5 PF: > { %p2709_p6 = scmp.eq.s32.totalorder %s3139_s28, 1  ;;  %s3078_s30 = smov [#allocation9]  }
0x10e6   : > { %s2232_s13 = sshll.u32 %s3078_s30, 4  ;;  %s2233_s13 = int_to_ptr.vmem [resolvable:$true] %s2232_s13 }
0x10e7   : > { %s2995_s8 = scalar_lea.vmem %s2233_s13, 128  ;;  %p3002_p12 = scmp.lt.s32.totalorder %s2233_s13, %s2233_s13 }
0x10e8   : > { %p2996_p9 = scmp.ne.s32.totalorder %s2233_s13, %s2995_s8  ;;  %p3003_p0 = scmp.lt.s32.totalorder %s2995_s8, %s2995_s8 }
0x10ea   : > { %p2997_p11 = pnand %p2996_p9, %p2709_p6  ;;  %p3004_p1 = por %p3003_p0, %p3002_p12 }
0x10ec   : > { %p2998_p7 = pneg %p2997_p11 }
0x10ee   : > { %p3005_p2 = pnand %p3004_p1, %p2998_p7 }
0x10f0   : > { %3008 = shalt.err (!%p3005_p2)
}
0x10f1   : > { %s3079_s16 = smov 4  }
0x10f2   : > { %2695 = dma.vmem_to_hbm [thread:$0]  (%p2709_p6), %s2233_s13, 128, %s3697_s7, [#allocation5], %s3076_s24, %s3076_s24, %s3079_s16  }
0x10f3   : > { %3044 = dma.done.wait (%p2709_p6), [#allocation5], 128  }
0x10f4   : > { %3046 = vsyncadd (%p2709_p6), [#allocation5], 4294967168 }
0x10f5 PF: > { %s3708_s15 = sld [smem:[#allocation13_spill]]  ;;  %p21_p3 = scmp.ge.s32.totalorder %s3142_s29, 4  }
0x10f6   : > { %s3709_s24 = smov %s3053_s25  ;;  %s3710_s25 = smov %s3057_s26 }
0x10f7   : > { %s3712_s27 = smov %s3142_s29  ;;  %23 = sbr.rel (!%p21_p3) target bundleno = 8 (0x8), region = 123 }
0x10fb   : > { %s3711_s26 = smov %s3708_s15 }
0x10fc   :  { %2248 = vsyncpa [#allocation4], 1 }
0x10fd   :  { %2250 = vsyncpa [#allocation4 + $0x1], 1 }
0x10fe   :  { %2251 = vsyncpa [#allocation7], 1 }
0x10ff   :  { %2253 = vsyncpa [#allocation7 + $0x1], 1 }
0x1100   :  { %2254 = vsyncpa [#allocation5], 1 }
0x1101   :  { %2256 = vsyncpa [#allocation5 + $0x1], 1 }

</bundles_post_ra>
